<compile_context>
chip_gen: v7x
topology: tpu7x:2x2x1
jax: 0.10.0
libtpu: 0.0.40
codegen_flags: <defaults>
</compile_context>

<pallas_src>
import math
import functools

import jax
import jax.numpy as jnp
from jax.experimental import pallas as pl
from jax.experimental.pallas import tpu as pltpu


def _transformer_block_kernel(n_heads, d_k, eps, mm_dtype,
                              x_ref, mask_ref,
                              wq_ref, bq_ref, wk_ref, bk_ref, wv_ref, bv_ref,
                              wo_ref, bo_ref,
                              g1_ref, be1_ref, g2_ref, be2_ref,
                              w1_ref, b1_ref, w2_ref, b2_ref,
                              o_ref):
    Bt, S, H = x_ref.shape
    R = Bt * S

    x = x_ref[...].reshape(R, H)                      # [R, H] f32

    # ---- LayerNorm 1 (pre-norm of attention sublayer) ----
    mu = jnp.mean(x, axis=-1, keepdims=True)
    var = jnp.mean((x - mu) ** 2, axis=-1, keepdims=True)
    h1 = (x - mu) * jax.lax.rsqrt(var + eps) * g1_ref[...] + be1_ref[...]

    # ---- QKV projections: one [R, H] x [H, H] matmul each ----
    h1m = h1.astype(mm_dtype)
    q = jnp.dot(h1m, wq_ref[...], preferred_element_type=jnp.float32) + bq_ref[...]
    k = jnp.dot(h1m, wk_ref[...], preferred_element_type=jnp.float32) + bk_ref[...]
    v = jnp.dot(h1m, wv_ref[...], preferred_element_type=jnp.float32) + bv_ref[...]

    # Fold the softmax scale into q once (not per-head on [S, S] scores).
    q = q * (1.0 / math.sqrt(d_k))

    q3 = q.reshape(Bt, S, H)
    k3 = k.reshape(Bt, S, H)
    v3 = v.reshape(Bt, S, H)

    # Additive mask bias, computed once outside the head loop.
    bias = jnp.where(mask_ref[...] == 0, -1e9, 0.0)   # [Bt, S, S] f32

    # ---- Multi-head attention: accumulate each head straight into Wo ----
    acc = jnp.zeros((R, H), jnp.float32)
    for hi in range(n_heads):
        sl = slice(hi * d_k, (hi + 1) * d_k)
        qh = q3[:, :, sl].astype(mm_dtype)            # [Bt, S, d_k]
        kh = k3[:, :, sl].astype(mm_dtype)
        vh = v3[:, :, sl].astype(mm_dtype)
        # Contraction on the last dim of both operands -- no explicit kh.T.
        s = jnp.einsum('bqd,bkd->bqk', qh, kh,
                       preferred_element_type=jnp.float32) + bias   # [Bt, S, S]
        m = jnp.max(s, axis=-1, keepdims=True)
        e = jnp.exp(s - m)
        denom = jnp.sum(e, axis=-1, keepdims=True)
        # One reciprocal per row + broadcast multiply instead of a full [S,S] divide.
        p = e * pl.reciprocal(denom, approx=False)
        head = jnp.einsum('bqk,bkd->bqd', p.astype(mm_dtype), vh,
                          preferred_element_type=jnp.float32)       # [Bt, S, d_k]
        # concat-then-matmul == sum of per-head matmuls against row-slices of Wo.
        acc = acc + jnp.dot(head.reshape(R, d_k).astype(mm_dtype),
                            wo_ref[sl, :],
                            preferred_element_type=jnp.float32)

    # residual 1 (+ output-projection bias, added once)
    x2 = x + acc + bo_ref[...]

    # ---- LayerNorm 2 (pre-norm of feed-forward sublayer) ----
    mu2 = jnp.mean(x2, axis=-1, keepdims=True)
    var2 = jnp.mean((x2 - mu2) ** 2, axis=-1, keepdims=True)
    h2 = (x2 - mu2) * jax.lax.rsqrt(var2 + eps) * g2_ref[...] + be2_ref[...]

    # ---- Position-wise feed-forward with tanh-GELU (f32 element-wise math) ----
    t = jnp.dot(h2.astype(mm_dtype), w1_ref[...],
                preferred_element_type=jnp.float32) + b1_ref[...]
    t2 = t * t
    g = 0.5 * t * (1.0 + jnp.tanh(math.sqrt(2.0 / math.pi) * (t + 0.044715 * t * t2)))
    ff = jnp.dot(g.astype(mm_dtype), w2_ref[...],
                 preferred_element_type=jnp.float32) + b2_ref[...]

    # residual 2
    o_ref[...] = (x2 + ff).reshape(Bt, S, H).astype(o_ref.dtype)


def _pick_batch_block(B, S, max_rows=512):
    """Largest divisor of B such that Bt*S stays within a moderate row budget."""
    best = 1
    for bt in range(1, B + 1):
        if B % bt == 0 and bt * S <= max_rows:
            best = bt
    return best


def _const_spec(shape):
    """Full-array block, constant index map, single-buffered (weights never change
    across grid steps, so don't double their VMEM footprint)."""
    if hasattr(pl, "Buffered"):
        try:
            return pl.BlockSpec(shape, lambda b: (0, 0), pipeline_mode=pl.Buffered(1))
        except TypeError:
            pass
    return pl.BlockSpec(shape, lambda b: (0, 0))


def transformer_block(x, mask, params, *, n_heads, eps=1e-5, use_bf16=False,
                      max_rows=512):
    B, S, H = x.shape
    d_k = H // n_heads
    d_ff = params["w1"].shape[1]

    Bt = _pick_batch_block(B, S, max_rows)
    mm_dtype = jnp.bfloat16 if use_bf16 else jnp.float32

    # Big matmul weights stored in the matmul-operand dtype (halves HBM->VMEM DMA and
    # resident VMEM when bf16); biases and LayerNorm params stay f32.
    wq = params["wq"].astype(mm_dtype)
    wk = params["wk"].astype(mm_dtype)
    wv = params["wv"].astype(mm_dtype)
    wo = params["wo"].astype(mm_dtype)
    w1 = params["w1"].astype(mm_dtype)
    w2 = params["w2"].astype(mm_dtype)

    kernel = functools.partial(_transformer_block_kernel, n_heads, d_k, eps, mm_dtype)

    in_specs = [
        pl.BlockSpec((Bt, S, H), lambda b: (b, 0, 0)),   # x (double-buffered)
        pl.BlockSpec((Bt, S, S), lambda b: (b, 0, 0)),   # mask (double-buffered)
        _const_spec((H, H)), _const_spec((1, H)),        # wq, bq
        _const_spec((H, H)), _const_spec((1, H)),        # wk, bk
        _const_spec((H, H)), _const_spec((1, H)),        # wv, bv
        _const_spec((H, H)), _const_spec((1, H)),        # wo, bo
        _const_spec((1, H)), _const_spec((1, H)),        # ln1 gamma, beta
        _const_spec((1, H)), _const_spec((1, H)),        # ln2 gamma, beta
        _const_spec((H, d_ff)), _const_spec((1, d_ff)),  # w1, b1
        _const_spec((d_ff, H)), _const_spec((1, H)),     # w2, b2
    ]

    # Explicit VMEM budget derived from the actual block footprint (weights single
    # buffer, activations double buffer, working set), with 2x headroom; capped so it
    # stays within every chip's physical VMEM (incl. v7x's 64 MiB).
    wsize = jnp.dtype(mm_dtype).itemsize
    weight_bytes = wsize * (4 * H * H + 2 * H * d_ff) + 4 * (9 * H + d_ff)
    block_bytes = 4 * (2 * Bt * S * H + Bt * S * S)                 # x, out, mask
    work_bytes = 4 * (Bt * S * (6 * H + d_ff) + 3 * Bt * S * S)     # intermediates
    est = weight_bytes + 2 * block_bytes + work_bytes
    vmem_limit = int(min(64 * 2 ** 20, max(16 * 2 ** 20, 2 * est)))

    return pl.pallas_call(
        kernel,
        out_shape=jax.ShapeDtypeStruct((B, S, H), jnp.float32),
        grid=(B // Bt,),
        in_specs=in_specs,
        out_specs=pl.BlockSpec((Bt, S, H), lambda b: (b, 0, 0)),
        compiler_params=pltpu.CompilerParams(
            dimension_semantics=("parallel",),
            vmem_limit_bytes=vmem_limit,
        ),
    )(
        x, mask,
        wq, params["bq"], wk, params["bk"], wv, params["bv"], wo, params["bo"],
        params["g1"], params["be1"], params["g2"], params["be2"],
        w1, params["b1"], w2, params["b2"],
    )


def _reference(x, mask, p, n_heads, eps=1e-5):
    B, S, H = x.shape
    d_k = H // n_heads

    def ln(z, g, b):
        mu = jnp.mean(z, -1, keepdims=True)
        var = jnp.mean((z - mu) ** 2, -1, keepdims=True)
        return (z - mu) / jnp.sqrt(var + eps) * g + b

    h1 = ln(x, p["g1"], p["be1"])
    q = h1 @ p["wq"] + p["bq"]
    k = h1 @ p["wk"] + p["bk"]
    v = h1 @ p["wv"] + p["bv"]

    def heads(z):
        return z.reshape(B, S, n_heads, d_k).transpose(0, 2, 1, 3)

    qh, kh, vh = heads(q), heads(k), heads(v)
    scores = jnp.einsum("bhqd,bhkd->bhqk", qh, kh) / math.sqrt(d_k)
    scores = jnp.where(mask[:, None, :, :] == 0, -1e9, scores)
    pa = jax.nn.softmax(scores, axis=-1)
    a = jnp.einsum("bhqk,bhkd->bhqd", pa, vh).transpose(0, 2, 1, 3).reshape(B, S, H)
    a = a @ p["wo"] + p["bo"]
    x2 = x + a
    h2 = ln(x2, p["g2"], p["be2"])
    t = h2 @ p["w1"] + p["b1"]
    g = 0.5 * t * (1.0 + jnp.tanh(math.sqrt(2.0 / math.pi) * (t + 0.044715 * t ** 3)))
    return x2 + g @ p["w2"] + p["b2"]


if __name__ == "__main__":
    B, S, H = 2, 8, 32
    n_heads, d_ff = 4, 128

    key = jax.random.PRNGKey(0)
    ks = jax.random.split(key, 16)

    def lin(k, fan_in, shape):
        bound = 1.0 / math.sqrt(fan_in)
        return jax.random.uniform(k, shape, jnp.float32, -bound, bound)

    params = {
        "wq": lin(ks[0], H, (H, H)), "bq": lin(ks[1], H, (1, H)),
        "wk": lin(ks[2], H, (H, H)), "bk": lin(ks[3], H, (1, H)),
        "wv": lin(ks[4], H, (H, H)), "bv": lin(ks[5], H, (1, H)),
        "wo": lin(ks[6], H, (H, H)), "bo": lin(ks[7], H, (1, H)),
        "g1": jnp.ones((1, H), jnp.float32), "be1": jnp.zeros((1, H), jnp.float32),
        "g2": jnp.ones((1, H), jnp.float32), "be2": jnp.zeros((1, H), jnp.float32),
        "w1": lin(ks[8], H, (H, d_ff)), "b1": lin(ks[9], H, (1, d_ff)),
        "w2": lin(ks[10], d_ff, (d_ff, H)), "b2": lin(ks[11], d_ff, (1, H)),
    }

    x = jax.random.normal(ks[12], (B, S, H), jnp.float32)
    # mask: 1 = attend, 0 = masked (key padding). Make a few positions masked.
    valid = (jax.random.uniform(ks[13], (B, S)) > 0.2).astype(jnp.float32)
    mask = jnp.einsum("bq,bk->bqk", jnp.ones((B, S), jnp.float32), valid)  # [B, S, S]

    ref = _reference(x, mask, params, n_heads)

    # f32-operand path: exact match against the reference.
    out = transformer_block(x, mask, params, n_heads=n_heads)
    out = jax.block_until_ready(out)
    assert jnp.allclose(out, ref, atol=1e-4, rtol=1e-4), "f32 mismatch vs reference"

    # bf16-operand path (v6e/v7x MXU optimization; f32 accumulation + f32 elementwise).
    out_bf16 = transformer_block(x, mask, params, n_heads=n_heads, use_bf16=True)
    out_bf16 = jax.block_until_ready(out_bf16)
    assert jnp.allclose(out_bf16, ref, atol=1e-1, rtol=1e-1), "bf16 mismatch vs reference"

    print("KERNEL_OK")
</pallas_src>

<mosaic_0001>
module attributes {stable_mosaic.version = 11 : i64} {
  func.func @_transformer_block_kernel(%arg0: i32, %arg1: memref<2x8x32xf32, #tpu.memory_space<vmem>>, %arg2: memref<2x8x8xf32, #tpu.memory_space<vmem>>, %arg3: memref<32x32xf32, #tpu.memory_space<vmem>>, %arg4: memref<1x32xf32, #tpu.memory_space<vmem>>, %arg5: memref<32x32xf32, #tpu.memory_space<vmem>>, %arg6: memref<1x32xf32, #tpu.memory_space<vmem>>, %arg7: memref<32x32xf32, #tpu.memory_space<vmem>>, %arg8: memref<1x32xf32, #tpu.memory_space<vmem>>, %arg9: memref<32x32xf32, #tpu.memory_space<vmem>>, %arg10: memref<1x32xf32, #tpu.memory_space<vmem>>, %arg11: memref<1x32xf32, #tpu.memory_space<vmem>>, %arg12: memref<1x32xf32, #tpu.memory_space<vmem>>, %arg13: memref<1x32xf32, #tpu.memory_space<vmem>>, %arg14: memref<1x32xf32, #tpu.memory_space<vmem>>, %arg15: memref<32x128xf32, #tpu.memory_space<vmem>>, %arg16: memref<1x128xf32, #tpu.memory_space<vmem>>, %arg17: memref<128x32xf32, #tpu.memory_space<vmem>>, %arg18: memref<1x32xf32, #tpu.memory_space<vmem>>, %arg19: memref<2x8x32xf32, #tpu.memory_space<vmem>>) attributes {dimension_semantics = [#tpu.dimension_semantics<parallel>], iteration_bounds = array<i64: 1>, scalar_prefetch = 0 : i64, scratch_operands = 0 : i64, tpu.core_type = #tpu.core_type<tc>, window_params = [{transform_indices = @transform_0, window_bounds = array<i64: 2, 8, 32>}, {transform_indices = @transform_1, window_bounds = array<i64: 2, 8, 8>}, {pipeline_mode = #tpu.pipeline_mode<synchronous>, transform_indices = @transform_2, window_bounds = array<i64: 32, 32>}, {pipeline_mode = #tpu.pipeline_mode<synchronous>, transform_indices = @transform_3, window_bounds = array<i64: 1, 32>}, {pipeline_mode = #tpu.pipeline_mode<synchronous>, transform_indices = @transform_4, window_bounds = array<i64: 32, 32>}, {pipeline_mode = #tpu.pipeline_mode<synchronous>, transform_indices = @transform_5, window_bounds = array<i64: 1, 32>}, {pipeline_mode = #tpu.pipeline_mode<synchronous>, transform_indices = @transform_6, window_bounds = array<i64: 32, 32>}, {pipeline_mode = #tpu.pipeline_mode<synchronous>, transform_indices = @transform_7, window_bounds = array<i64: 1, 32>}, {pipeline_mode = #tpu.pipeline_mode<synchronous>, transform_indices = @transform_8, window_bounds = array<i64: 32, 32>}, {pipeline_mode = #tpu.pipeline_mode<synchronous>, transform_indices = @transform_9, window_bounds = array<i64: 1, 32>}, {pipeline_mode = #tpu.pipeline_mode<synchronous>, transform_indices = @transform_10, window_bounds = array<i64: 1, 32>}, {pipeline_mode = #tpu.pipeline_mode<synchronous>, transform_indices = @transform_11, window_bounds = array<i64: 1, 32>}, {pipeline_mode = #tpu.pipeline_mode<synchronous>, transform_indices = @transform_12, window_bounds = array<i64: 1, 32>}, {pipeline_mode = #tpu.pipeline_mode<synchronous>, transform_indices = @transform_13, window_bounds = array<i64: 1, 32>}, {pipeline_mode = #tpu.pipeline_mode<synchronous>, transform_indices = @transform_14, window_bounds = array<i64: 32, 128>}, {pipeline_mode = #tpu.pipeline_mode<synchronous>, transform_indices = @transform_15, window_bounds = array<i64: 1, 128>}, {pipeline_mode = #tpu.pipeline_mode<synchronous>, transform_indices = @transform_16, window_bounds = array<i64: 128, 32>}, {pipeline_mode = #tpu.pipeline_mode<synchronous>, transform_indices = @transform_17, window_bounds = array<i64: 1, 32>}, {transform_indices = @transform_18, window_bounds = array<i64: 2, 8, 32>}]} {
    %c0 = arith.constant 0 : index
    %c0_0 = arith.constant 0 : index
    %c0_1 = arith.constant 0 : index
    %0 = vector.load %arg1[%c0, %c0_0, %c0_1] : memref<2x8x32xf32, #tpu.memory_space<vmem>>, vector<2x8x32xf32>
    %1 = vector.shape_cast %0 : vector<2x8x32xf32> to vector<16x32xf32>
    %cst = arith.constant dense<0.000000e+00> : vector<16xf32>
    %2 = vector.multi_reduction <add>, %1, %cst [1] : vector<16x32xf32> to vector<16xf32>
    %3 = vector.shape_cast %2 : vector<16xf32> to vector<16x1xf32>
    %cst_2 = arith.constant 3.200000e+01 : f32
    %4 = vector.broadcast %cst_2 : f32 to vector<16x1xf32>
    %5 = arith.divf %3, %4 : vector<16x1xf32>
    %6 = vector.broadcast %5 : vector<16x1xf32> to vector<16x32xf32>
    %7 = arith.subf %1, %6 : vector<16x32xf32>
    %8 = arith.mulf %7, %7 : vector<16x32xf32>
    %cst_3 = arith.constant dense<0.000000e+00> : vector<16xf32>
    %9 = vector.multi_reduction <add>, %8, %cst_3 [1] : vector<16x32xf32> to vector<16xf32>
    %10 = vector.shape_cast %9 : vector<16xf32> to vector<16x1xf32>
    %cst_4 = arith.constant 3.200000e+01 : f32
    %11 = vector.broadcast %cst_4 : f32 to vector<16x1xf32>
    %12 = arith.divf %10, %11 : vector<16x1xf32>
    %13 = vector.broadcast %5 : vector<16x1xf32> to vector<16x32xf32>
    %14 = arith.subf %1, %13 : vector<16x32xf32>
    %cst_5 = arith.constant 9.99999974E-6 : f32
    %15 = vector.broadcast %cst_5 : f32 to vector<16x1xf32>
    %16 = arith.addf %12, %15 : vector<16x1xf32>
    %17 = math.rsqrt %16 : vector<16x1xf32>
    %18 = vector.broadcast %17 : vector<16x1xf32> to vector<16x32xf32>
    %19 = arith.mulf %14, %18 : vector<16x32xf32>
    %c0_6 = arith.constant 0 : index
    %c0_7 = arith.constant 0 : index
    %20 = vector.load %arg11[%c0_6, %c0_7] : memref<1x32xf32, #tpu.memory_space<vmem>>, vector<1x32xf32>
    %21 = vector.broadcast %20 : vector<1x32xf32> to vector<16x32xf32>
    %22 = arith.mulf %19, %21 : vector<16x32xf32>
    %c0_8 = arith.constant 0 : index
    %c0_9 = arith.constant 0 : index
    %23 = vector.load %arg12[%c0_8, %c0_9] : memref<1x32xf32, #tpu.memory_space<vmem>>, vector<1x32xf32>
    %24 = vector.broadcast %23 : vector<1x32xf32> to vector<16x32xf32>
    %25 = arith.addf %22, %24 : vector<16x32xf32>
    %c0_10 = arith.constant 0 : index
    %c0_11 = arith.constant 0 : index
    %26 = vector.load %arg3[%c0_10, %c0_11] : memref<32x32xf32, #tpu.memory_space<vmem>>, vector<32x32xf32>
    %cst_12 = arith.constant dense<0.000000e+00> : vector<16x32xf32>
    %27 = tpu.matmul %25, %26, %cst_12 {dimension_numbers = #tpu.dot_dimension_numbers<[1], [0], [0], [1], [0, 0, 1, 1], [], []>} : vector<16x32xf32>, vector<32x32xf32>, vector<16x32xf32> -> vector<16x32xf32>
    %c0_13 = arith.constant 0 : index
    %c0_14 = arith.constant 0 : index
    %28 = vector.load %arg4[%c0_13, %c0_14] : memref<1x32xf32, #tpu.memory_space<vmem>>, vector<1x32xf32>
    %29 = vector.broadcast %28 : vector<1x32xf32> to vector<16x32xf32>
    %30 = arith.addf %27, %29 : vector<16x32xf32>
    %c0_15 = arith.constant 0 : index
    %c0_16 = arith.constant 0 : index
    %31 = vector.load %arg5[%c0_15, %c0_16] : memref<32x32xf32, #tpu.memory_space<vmem>>, vector<32x32xf32>
    %cst_17 = arith.constant dense<0.000000e+00> : vector<16x32xf32>
    %32 = tpu.matmul %25, %31, %cst_17 {dimension_numbers = #tpu.dot_dimension_numbers<[1], [0], [0], [1], [0, 0, 1, 1], [], []>} : vector<16x32xf32>, vector<32x32xf32>, vector<16x32xf32> -> vector<16x32xf32>
    %c0_18 = arith.constant 0 : index
    %c0_19 = arith.constant 0 : index
    %33 = vector.load %arg6[%c0_18, %c0_19] : memref<1x32xf32, #tpu.memory_space<vmem>>, vector<1x32xf32>
    %34 = vector.broadcast %33 : vector<1x32xf32> to vector<16x32xf32>
    %35 = arith.addf %32, %34 : vector<16x32xf32>
    %c0_20 = arith.constant 0 : index
    %c0_21 = arith.constant 0 : index
    %36 = vector.load %arg7[%c0_20, %c0_21] : memref<32x32xf32, #tpu.memory_space<vmem>>, vector<32x32xf32>
    %cst_22 = arith.constant dense<0.000000e+00> : vector<16x32xf32>
    %37 = tpu.matmul %25, %36, %cst_22 {dimension_numbers = #tpu.dot_dimension_numbers<[1], [0], [0], [1], [0, 0, 1, 1], [], []>} : vector<16x32xf32>, vector<32x32xf32>, vector<16x32xf32> -> vector<16x32xf32>
    %c0_23 = arith.constant 0 : index
    %c0_24 = arith.constant 0 : index
    %38 = vector.load %arg8[%c0_23, %c0_24] : memref<1x32xf32, #tpu.memory_space<vmem>>, vector<1x32xf32>
    %39 = vector.broadcast %38 : vector<1x32xf32> to vector<16x32xf32>
    %40 = arith.addf %37, %39 : vector<16x32xf32>
    %cst_25 = arith.constant 0.353553385 : f32
    %41 = vector.broadcast %cst_25 : f32 to vector<16x32xf32>
    %42 = arith.mulf %30, %41 : vector<16x32xf32>
    %43 = vector.shape_cast %42 : vector<16x32xf32> to vector<2x8x32xf32>
    %44 = vector.shape_cast %35 : vector<16x32xf32> to vector<2x8x32xf32>
    %45 = vector.shape_cast %40 : vector<16x32xf32> to vector<2x8x32xf32>
    %c0_26 = arith.constant 0 : index
    %c0_27 = arith.constant 0 : index
    %c0_28 = arith.constant 0 : index
    %46 = vector.load %arg2[%c0_26, %c0_27, %c0_28] : memref<2x8x8xf32, #tpu.memory_space<vmem>>, vector<2x8x8xf32>
    %cst_29 = arith.constant 0.000000e+00 : f32
    %47 = vector.broadcast %cst_29 : f32 to vector<2x8x8xf32>
    %48 = arith.cmpf oeq, %46, %47 : vector<2x8x8xf32>
    %cst_30 = arith.constant -1.000000e+09 : f32
    %cst_31 = arith.constant 0.000000e+00 : f32
    %49 = vector.broadcast %cst_30 : f32 to vector<2x8x8xf32>
    %50 = vector.broadcast %cst_31 : f32 to vector<2x8x8xf32>
    %51 = arith.select %48, %49, %50 : vector<2x8x8xi1>, vector<2x8x8xf32>
    %cst_32 = arith.constant 0.000000e+00 : f32
    %52 = vector.broadcast %cst_32 : f32 to vector<16x32xf32>
    %53 = vector.extract_strided_slice %43 {offsets = [0, 0, 0], sizes = [2, 8, 8], strides = [1, 1, 1]} : vector<2x8x32xf32> to vector<2x8x8xf32>
    %54 = vector.extract_strided_slice %44 {offsets = [0, 0, 0], sizes = [2, 8, 8], strides = [1, 1, 1]} : vector<2x8x32xf32> to vector<2x8x8xf32>
    %55 = vector.extract_strided_slice %45 {offsets = [0, 0, 0], sizes = [2, 8, 8], strides = [1, 1, 1]} : vector<2x8x32xf32> to vector<2x8x8xf32>
    "tpu.trace_start"() <{level = 10 : i32, message = "bqd,bkd->bqk"}> : () -> ()
    %cst_33 = arith.constant dense<0.000000e+00> : vector<2x8x8xf32>
    %56 = tpu.matmul %53, %54, %cst_33 {dimension_numbers = #tpu.dot_dimension_numbers<[2], [2], [1], [1], [0, 0, 0, 1, 1, 1], [0], [0]>} : vector<2x8x8xf32>, vector<2x8x8xf32>, vector<2x8x8xf32> -> vector<2x8x8xf32>
    "tpu.trace_stop"() : () -> ()
    %57 = arith.addf %56, %51 : vector<2x8x8xf32>
    %cst_34 = arith.constant dense<0xFF800000> : vector<2x8xf32>
    %58 = vector.multi_reduction <maximumf>, %57, %cst_34 [2] : vector<2x8x8xf32> to vector<2x8xf32>
    %59 = vector.shape_cast %58 : vector<2x8xf32> to vector<2x8x1xf32>
    %60 = vector.broadcast %59 : vector<2x8x1xf32> to vector<2x8x8xf32>
    %61 = arith.subf %57, %60 : vector<2x8x8xf32>
    %62 = math.exp %61 : vector<2x8x8xf32>
    %cst_35 = arith.constant dense<0.000000e+00> : vector<2x8xf32>
    %63 = vector.multi_reduction <add>, %62, %cst_35 [2] : vector<2x8x8xf32> to vector<2x8xf32>
    %64 = vector.shape_cast %63 : vector<2x8xf32> to vector<2x8x1xf32>
    %65 = tpu.reciprocal %64 : vector<2x8x1xf32> -> vector<2x8x1xf32>
    %66 = vector.broadcast %65 : vector<2x8x1xf32> to vector<2x8x8xf32>
    %67 = arith.mulf %62, %66 : vector<2x8x8xf32>
    "tpu.trace_start"() <{level = 10 : i32, message = "bqk,bkd->bqd"}> : () -> ()
    %cst_36 = arith.constant dense<0.000000e+00> : vector<2x8x8xf32>
    %68 = tpu.matmul %67, %55, %cst_36 {dimension_numbers = #tpu.dot_dimension_numbers<[2], [1], [1], [2], [0, 0, 0, 1, 1, 2], [0], [0]>} : vector<2x8x8xf32>, vector<2x8x8xf32>, vector<2x8x8xf32> -> vector<2x8x8xf32>
    "tpu.trace_stop"() : () -> ()
    %69 = vector.shape_cast %68 : vector<2x8x8xf32> to vector<16x8xf32>
    %c0_37 = arith.constant 0 : index
    %c0_38 = arith.constant 0 : index
    %70 = vector.load %arg9[%c0_37, %c0_38] : memref<32x32xf32, #tpu.memory_space<vmem>>, vector<8x32xf32>
    %cst_39 = arith.constant dense<0.000000e+00> : vector<16x32xf32>
    %71 = tpu.matmul %69, %70, %cst_39 {dimension_numbers = #tpu.dot_dimension_numbers<[1], [0], [0], [1], [0, 0, 1, 1], [], []>} : vector<16x8xf32>, vector<8x32xf32>, vector<16x32xf32> -> vector<16x32xf32>
    %72 = arith.addf %52, %71 : vector<16x32xf32>
    %73 = vector.extract_strided_slice %43 {offsets = [0, 0, 8], sizes = [2, 8, 8], strides = [1, 1, 1]} : vector<2x8x32xf32> to vector<2x8x8xf32>
    %74 = vector.extract_strided_slice %44 {offsets = [0, 0, 8], sizes = [2, 8, 8], strides = [1, 1, 1]} : vector<2x8x32xf32> to vector<2x8x8xf32>
    %75 = vector.extract_strided_slice %45 {offsets = [0, 0, 8], sizes = [2, 8, 8], strides = [1, 1, 1]} : vector<2x8x32xf32> to vector<2x8x8xf32>
    "tpu.trace_start"() <{level = 10 : i32, message = "bqd,bkd->bqk"}> : () -> ()
    %cst_40 = arith.constant dense<0.000000e+00> : vector<2x8x8xf32>
    %76 = tpu.matmul %73, %74, %cst_40 {dimension_numbers = #tpu.dot_dimension_numbers<[2], [2], [1], [1], [0, 0, 0, 1, 1, 1], [0], [0]>} : vector<2x8x8xf32>, vector<2x8x8xf32>, vector<2x8x8xf32> -> vector<2x8x8xf32>
    "tpu.trace_stop"() : () -> ()
    %77 = arith.addf %76, %51 : vector<2x8x8xf32>
    %cst_41 = arith.constant dense<0xFF800000> : vector<2x8xf32>
    %78 = vector.multi_reduction <maximumf>, %77, %cst_41 [2] : vector<2x8x8xf32> to vector<2x8xf32>
    %79 = vector.shape_cast %78 : vector<2x8xf32> to vector<2x8x1xf32>
    %80 = vector.broadcast %79 : vector<2x8x1xf32> to vector<2x8x8xf32>
    %81 = arith.subf %77, %80 : vector<2x8x8xf32>
    %82 = math.exp %81 : vector<2x8x8xf32>
    %cst_42 = arith.constant dense<0.000000e+00> : vector<2x8xf32>
    %83 = vector.multi_reduction <add>, %82, %cst_42 [2] : vector<2x8x8xf32> to vector<2x8xf32>
    %84 = vector.shape_cast %83 : vector<2x8xf32> to vector<2x8x1xf32>
    %85 = tpu.reciprocal %84 : vector<2x8x1xf32> -> vector<2x8x1xf32>
    %86 = vector.broadcast %85 : vector<2x8x1xf32> to vector<2x8x8xf32>
    %87 = arith.mulf %82, %86 : vector<2x8x8xf32>
    "tpu.trace_start"() <{level = 10 : i32, message = "bqk,bkd->bqd"}> : () -> ()
    %cst_43 = arith.constant dense<0.000000e+00> : vector<2x8x8xf32>
    %88 = tpu.matmul %87, %75, %cst_43 {dimension_numbers = #tpu.dot_dimension_numbers<[2], [1], [1], [2], [0, 0, 0, 1, 1, 2], [0], [0]>} : vector<2x8x8xf32>, vector<2x8x8xf32>, vector<2x8x8xf32> -> vector<2x8x8xf32>
    "tpu.trace_stop"() : () -> ()
    %89 = vector.shape_cast %88 : vector<2x8x8xf32> to vector<16x8xf32>
    %c8 = arith.constant 8 : index
    %c0_44 = arith.constant 0 : index
    %90 = vector.load %arg9[%c8, %c0_44] : memref<32x32xf32, #tpu.memory_space<vmem>>, vector<8x32xf32>
    %cst_45 = arith.constant dense<0.000000e+00> : vector<16x32xf32>
    %91 = tpu.matmul %89, %90, %cst_45 {dimension_numbers = #tpu.dot_dimension_numbers<[1], [0], [0], [1], [0, 0, 1, 1], [], []>} : vector<16x8xf32>, vector<8x32xf32>, vector<16x32xf32> -> vector<16x32xf32>
    %92 = arith.addf %72, %91 : vector<16x32xf32>
    %93 = vector.extract_strided_slice %43 {offsets = [0, 0, 16], sizes = [2, 8, 8], strides = [1, 1, 1]} : vector<2x8x32xf32> to vector<2x8x8xf32>
    %94 = vector.extract_strided_slice %44 {offsets = [0, 0, 16], sizes = [2, 8, 8], strides = [1, 1, 1]} : vector<2x8x32xf32> to vector<2x8x8xf32>
    %95 = vector.extract_strided_slice %45 {offsets = [0, 0, 16], sizes = [2, 8, 8], strides = [1, 1, 1]} : vector<2x8x32xf32> to vector<2x8x8xf32>
    "tpu.trace_start"() <{level = 10 : i32, message = "bqd,bkd->bqk"}> : () -> ()
    %cst_46 = arith.constant dense<0.000000e+00> : vector<2x8x8xf32>
    %96 = tpu.matmul %93, %94, %cst_46 {dimension_numbers = #tpu.dot_dimension_numbers<[2], [2], [1], [1], [0, 0, 0, 1, 1, 1], [0], [0]>} : vector<2x8x8xf32>, vector<2x8x8xf32>, vector<2x8x8xf32> -> vector<2x8x8xf32>
    "tpu.trace_stop"() : () -> ()
    %97 = arith.addf %96, %51 : vector<2x8x8xf32>
    %cst_47 = arith.constant dense<0xFF800000> : vector<2x8xf32>
    %98 = vector.multi_reduction <maximumf>, %97, %cst_47 [2] : vector<2x8x8xf32> to vector<2x8xf32>
    %99 = vector.shape_cast %98 : vector<2x8xf32> to vector<2x8x1xf32>
    %100 = vector.broadcast %99 : vector<2x8x1xf32> to vector<2x8x8xf32>
    %101 = arith.subf %97, %100 : vector<2x8x8xf32>
    %102 = math.exp %101 : vector<2x8x8xf32>
    %cst_48 = arith.constant dense<0.000000e+00> : vector<2x8xf32>
    %103 = vector.multi_reduction <add>, %102, %cst_48 [2] : vector<2x8x8xf32> to vector<2x8xf32>
    %104 = vector.shape_cast %103 : vector<2x8xf32> to vector<2x8x1xf32>
    %105 = tpu.reciprocal %104 : vector<2x8x1xf32> -> vector<2x8x1xf32>
    %106 = vector.broadcast %105 : vector<2x8x1xf32> to vector<2x8x8xf32>
    %107 = arith.mulf %102, %106 : vector<2x8x8xf32>
    "tpu.trace_start"() <{level = 10 : i32, message = "bqk,bkd->bqd"}> : () -> ()
    %cst_49 = arith.constant dense<0.000000e+00> : vector<2x8x8xf32>
    %108 = tpu.matmul %107, %95, %cst_49 {dimension_numbers = #tpu.dot_dimension_numbers<[2], [1], [1], [2], [0, 0, 0, 1, 1, 2], [0], [0]>} : vector<2x8x8xf32>, vector<2x8x8xf32>, vector<2x8x8xf32> -> vector<2x8x8xf32>
    "tpu.trace_stop"() : () -> ()
    %109 = vector.shape_cast %108 : vector<2x8x8xf32> to vector<16x8xf32>
    %c16 = arith.constant 16 : index
    %c0_50 = arith.constant 0 : index
    %110 = vector.load %arg9[%c16, %c0_50] : memref<32x32xf32, #tpu.memory_space<vmem>>, vector<8x32xf32>
    %cst_51 = arith.constant dense<0.000000e+00> : vector<16x32xf32>
    %111 = tpu.matmul %109, %110, %cst_51 {dimension_numbers = #tpu.dot_dimension_numbers<[1], [0], [0], [1], [0, 0, 1, 1], [], []>} : vector<16x8xf32>, vector<8x32xf32>, vector<16x32xf32> -> vector<16x32xf32>
    %112 = arith.addf %92, %111 : vector<16x32xf32>
    %113 = vector.extract_strided_slice %43 {offsets = [0, 0, 24], sizes = [2, 8, 8], strides = [1, 1, 1]} : vector<2x8x32xf32> to vector<2x8x8xf32>
    %114 = vector.extract_strided_slice %44 {offsets = [0, 0, 24], sizes = [2, 8, 8], strides = [1, 1, 1]} : vector<2x8x32xf32> to vector<2x8x8xf32>
    %115 = vector.extract_strided_slice %45 {offsets = [0, 0, 24], sizes = [2, 8, 8], strides = [1, 1, 1]} : vector<2x8x32xf32> to vector<2x8x8xf32>
    "tpu.trace_start"() <{level = 10 : i32, message = "bqd,bkd->bqk"}> : () -> ()
    %cst_52 = arith.constant dense<0.000000e+00> : vector<2x8x8xf32>
    %116 = tpu.matmul %113, %114, %cst_52 {dimension_numbers = #tpu.dot_dimension_numbers<[2], [2], [1], [1], [0, 0, 0, 1, 1, 1], [0], [0]>} : vector<2x8x8xf32>, vector<2x8x8xf32>, vector<2x8x8xf32> -> vector<2x8x8xf32>
    "tpu.trace_stop"() : () -> ()
    %117 = arith.addf %116, %51 : vector<2x8x8xf32>
    %cst_53 = arith.constant dense<0xFF800000> : vector<2x8xf32>
    %118 = vector.multi_reduction <maximumf>, %117, %cst_53 [2] : vector<2x8x8xf32> to vector<2x8xf32>
    %119 = vector.shape_cast %118 : vector<2x8xf32> to vector<2x8x1xf32>
    %120 = vector.broadcast %119 : vector<2x8x1xf32> to vector<2x8x8xf32>
    %121 = arith.subf %117, %120 : vector<2x8x8xf32>
    %122 = math.exp %121 : vector<2x8x8xf32>
    %cst_54 = arith.constant dense<0.000000e+00> : vector<2x8xf32>
    %123 = vector.multi_reduction <add>, %122, %cst_54 [2] : vector<2x8x8xf32> to vector<2x8xf32>
    %124 = vector.shape_cast %123 : vector<2x8xf32> to vector<2x8x1xf32>
    %125 = tpu.reciprocal %124 : vector<2x8x1xf32> -> vector<2x8x1xf32>
    %126 = vector.broadcast %125 : vector<2x8x1xf32> to vector<2x8x8xf32>
    %127 = arith.mulf %122, %126 : vector<2x8x8xf32>
    "tpu.trace_start"() <{level = 10 : i32, message = "bqk,bkd->bqd"}> : () -> ()
    %cst_55 = arith.constant dense<0.000000e+00> : vector<2x8x8xf32>
    %128 = tpu.matmul %127, %115, %cst_55 {dimension_numbers = #tpu.dot_dimension_numbers<[2], [1], [1], [2], [0, 0, 0, 1, 1, 2], [0], [0]>} : vector<2x8x8xf32>, vector<2x8x8xf32>, vector<2x8x8xf32> -> vector<2x8x8xf32>
    "tpu.trace_stop"() : () -> ()
    %129 = vector.shape_cast %128 : vector<2x8x8xf32> to vector<16x8xf32>
    %c24 = arith.constant 24 : index
    %c0_56 = arith.constant 0 : index
    %130 = vector.load %arg9[%c24, %c0_56] : memref<32x32xf32, #tpu.memory_space<vmem>>, vector<8x32xf32>
    %cst_57 = arith.constant dense<0.000000e+00> : vector<16x32xf32>
    %131 = tpu.matmul %129, %130, %cst_57 {dimension_numbers = #tpu.dot_dimension_numbers<[1], [0], [0], [1], [0, 0, 1, 1], [], []>} : vector<16x8xf32>, vector<8x32xf32>, vector<16x32xf32> -> vector<16x32xf32>
    %132 = arith.addf %112, %131 : vector<16x32xf32>
    %133 = arith.addf %1, %132 : vector<16x32xf32>
    %c0_58 = arith.constant 0 : index
    %c0_59 = arith.constant 0 : index
    %134 = vector.load %arg10[%c0_58, %c0_59] : memref<1x32xf32, #tpu.memory_space<vmem>>, vector<1x32xf32>
    %135 = vector.broadcast %134 : vector<1x32xf32> to vector<16x32xf32>
    %136 = arith.addf %133, %135 : vector<16x32xf32>
    %cst_60 = arith.constant dense<0.000000e+00> : vector<16xf32>
    %137 = vector.multi_reduction <add>, %136, %cst_60 [1] : vector<16x32xf32> to vector<16xf32>
    %138 = vector.shape_cast %137 : vector<16xf32> to vector<16x1xf32>
    %cst_61 = arith.constant 3.200000e+01 : f32
    %139 = vector.broadcast %cst_61 : f32 to vector<16x1xf32>
    %140 = arith.divf %138, %139 : vector<16x1xf32>
    %141 = vector.broadcast %140 : vector<16x1xf32> to vector<16x32xf32>
    %142 = arith.subf %136, %141 : vector<16x32xf32>
    %143 = arith.mulf %142, %142 : vector<16x32xf32>
    %cst_62 = arith.constant dense<0.000000e+00> : vector<16xf32>
    %144 = vector.multi_reduction <add>, %143, %cst_62 [1] : vector<16x32xf32> to vector<16xf32>
    %145 = vector.shape_cast %144 : vector<16xf32> to vector<16x1xf32>
    %cst_63 = arith.constant 3.200000e+01 : f32
    %146 = vector.broadcast %cst_63 : f32 to vector<16x1xf32>
    %147 = arith.divf %145, %146 : vector<16x1xf32>
    %148 = vector.broadcast %140 : vector<16x1xf32> to vector<16x32xf32>
    %149 = arith.subf %136, %148 : vector<16x32xf32>
    %cst_64 = arith.constant 9.99999974E-6 : f32
    %150 = vector.broadcast %cst_64 : f32 to vector<16x1xf32>
    %151 = arith.addf %147, %150 : vector<16x1xf32>
    %152 = math.rsqrt %151 : vector<16x1xf32>
    %153 = vector.broadcast %152 : vector<16x1xf32> to vector<16x32xf32>
    %154 = arith.mulf %149, %153 : vector<16x32xf32>
    %c0_65 = arith.constant 0 : index
    %c0_66 = arith.constant 0 : index
    %155 = vector.load %arg13[%c0_65, %c0_66] : memref<1x32xf32, #tpu.memory_space<vmem>>, vector<1x32xf32>
    %156 = vector.broadcast %155 : vector<1x32xf32> to vector<16x32xf32>
    %157 = arith.mulf %154, %156 : vector<16x32xf32>
    %c0_67 = arith.constant 0 : index
    %c0_68 = arith.constant 0 : index
    %158 = vector.load %arg14[%c0_67, %c0_68] : memref<1x32xf32, #tpu.memory_space<vmem>>, vector<1x32xf32>
    %159 = vector.broadcast %158 : vector<1x32xf32> to vector<16x32xf32>
    %160 = arith.addf %157, %159 : vector<16x32xf32>
    %c0_69 = arith.constant 0 : index
    %c0_70 = arith.constant 0 : index
    %161 = vector.load %arg15[%c0_69, %c0_70] : memref<32x128xf32, #tpu.memory_space<vmem>>, vector<32x128xf32>
    %cst_71 = arith.constant dense<0.000000e+00> : vector<16x128xf32>
    %162 = tpu.matmul %160, %161, %cst_71 {dimension_numbers = #tpu.dot_dimension_numbers<[1], [0], [0], [1], [0, 0, 1, 1], [], []>} : vector<16x32xf32>, vector<32x128xf32>, vector<16x128xf32> -> vector<16x128xf32>
    %c0_72 = arith.constant 0 : index
    %c0_73 = arith.constant 0 : index
    %163 = vector.load %arg16[%c0_72, %c0_73] : memref<1x128xf32, #tpu.memory_space<vmem>>, vector<1x128xf32>
    %164 = vector.broadcast %163 : vector<1x128xf32> to vector<16x128xf32>
    %165 = arith.addf %162, %164 : vector<16x128xf32>
    %166 = arith.mulf %165, %165 : vector<16x128xf32>
    %cst_74 = arith.constant 5.000000e-01 : f32
    %167 = vector.broadcast %cst_74 : f32 to vector<16x128xf32>
    %168 = arith.mulf %167, %165 : vector<16x128xf32>
    %cst_75 = arith.constant 4.471500e-02 : f32
    %169 = vector.broadcast %cst_75 : f32 to vector<16x128xf32>
    %170 = arith.mulf %169, %165 : vector<16x128xf32>
    %171 = arith.mulf %170, %166 : vector<16x128xf32>
    %172 = arith.addf %165, %171 : vector<16x128xf32>
    %cst_76 = arith.constant 0.797884583 : f32
    %173 = vector.broadcast %cst_76 : f32 to vector<16x128xf32>
    %174 = arith.mulf %173, %172 : vector<16x128xf32>
    %175 = math.tanh %174 : vector<16x128xf32>
    %cst_77 = arith.constant 1.000000e+00 : f32
    %176 = vector.broadcast %cst_77 : f32 to vector<16x128xf32>
    %177 = arith.addf %176, %175 : vector<16x128xf32>
    %178 = arith.mulf %168, %177 : vector<16x128xf32>
    %c0_78 = arith.constant 0 : index
    %c0_79 = arith.constant 0 : index
    %179 = vector.load %arg17[%c0_78, %c0_79] : memref<128x32xf32, #tpu.memory_space<vmem>>, vector<128x32xf32>
    %cst_80 = arith.constant dense<0.000000e+00> : vector<16x32xf32>
    %180 = tpu.matmul %178, %179, %cst_80 {dimension_numbers = #tpu.dot_dimension_numbers<[1], [0], [0], [1], [0, 0, 1, 1], [], []>} : vector<16x128xf32>, vector<128x32xf32>, vector<16x32xf32> -> vector<16x32xf32>
    %c0_81 = arith.constant 0 : index
    %c0_82 = arith.constant 0 : index
    %181 = vector.load %arg18[%c0_81, %c0_82] : memref<1x32xf32, #tpu.memory_space<vmem>>, vector<1x32xf32>
    %182 = vector.broadcast %181 : vector<1x32xf32> to vector<16x32xf32>
    %183 = arith.addf %180, %182 : vector<16x32xf32>
    %184 = arith.addf %136, %183 : vector<16x32xf32>
    %185 = vector.shape_cast %184 : vector<16x32xf32> to vector<2x8x32xf32>
    %c0_83 = arith.constant 0 : index
    %c0_84 = arith.constant 0 : index
    %c0_85 = arith.constant 0 : index
    %186 = vector.load %arg19[%c0_83, %c0_84, %c0_85] : memref<2x8x32xf32, #tpu.memory_space<vmem>>, vector<2x8x32xf32>
    tpu.vector_store %arg19[%c0_83, %c0_84, %c0_85], %185 {strides = array<i32>} : memref<2x8x32xf32, #tpu.memory_space<vmem>>, vector<2x8x32xf32>,
    return
  }
  func.func @transform_0(%arg0: i32) -> (i32, i32, i32) {
    %c0_i32 = arith.constant 0 : i32
    %c0_i32_0 = arith.constant 0 : i32
    %c0_i32_1 = arith.constant 0 : i32
    return %arg0, %c0_i32, %c0_i32_0 : i32, i32, i32
  }
  func.func @transform_1(%arg0: i32) -> (i32, i32, i32) {
    %c0_i32 = arith.constant 0 : i32
    %c0_i32_0 = arith.constant 0 : i32
    %c0_i32_1 = arith.constant 0 : i32
    return %arg0, %c0_i32, %c0_i32_0 : i32, i32, i32
  }
  func.func @transform_2(%arg0: i32) -> (i32, i32) {
    %c0_i32 = arith.constant 0 : i32
    %c0_i32_0 = arith.constant 0 : i32
    %c0_i32_1 = arith.constant 0 : i32
    return %c0_i32, %c0_i32_0 : i32, i32
  }
  func.func @transform_3(%arg0: i32) -> (i32, i32) {
    %c0_i32 = arith.constant 0 : i32
    %c0_i32_0 = arith.constant 0 : i32
    %c0_i32_1 = arith.constant 0 : i32
    return %c0_i32, %c0_i32_0 : i32, i32
  }
  func.func @transform_4(%arg0: i32) -> (i32, i32) {
    %c0_i32 = arith.constant 0 : i32
    %c0_i32_0 = arith.constant 0 : i32
    %c0_i32_1 = arith.constant 0 : i32
    return %c0_i32, %c0_i32_0 : i32, i32
  }
  func.func @transform_5(%arg0: i32) -> (i32, i32) {
    %c0_i32 = arith.constant 0 : i32
    %c0_i32_0 = arith.constant 0 : i32
    %c0_i32_1 = arith.constant 0 : i32
    return %c0_i32, %c0_i32_0 : i32, i32
  }
  func.func @transform_6(%arg0: i32) -> (i32, i32) {
    %c0_i32 = arith.constant 0 : i32
    %c0_i32_0 = arith.constant 0 : i32
    %c0_i32_1 = arith.constant 0 : i32
    return %c0_i32, %c0_i32_0 : i32, i32
  }
  func.func @transform_7(%arg0: i32) -> (i32, i32) {
    %c0_i32 = arith.constant 0 : i32
    %c0_i32_0 = arith.constant 0 : i32
    %c0_i32_1 = arith.constant 0 : i32
    return %c0_i32, %c0_i32_0 : i32, i32
  }
  func.func @transform_8(%arg0: i32) -> (i32, i32) {
    %c0_i32 = arith.constant 0 : i32
    %c0_i32_0 = arith.constant 0 : i32
    %c0_i32_1 = arith.constant 0 : i32
    return %c0_i32, %c0_i32_0 : i32, i32
  }
  func.func @transform_9(%arg0: i32) -> (i32, i32) {
    %c0_i32 = arith.constant 0 : i32
    %c0_i32_0 = arith.constant 0 : i32
    %c0_i32_1 = arith.constant 0 : i32
    return %c0_i32, %c0_i32_0 : i32, i32
  }
  func.func @transform_10(%arg0: i32) -> (i32, i32) {
    %c0_i32 = arith.constant 0 : i32
    %c0_i32_0 = arith.constant 0 : i32
    %c0_i32_1 = arith.constant 0 : i32
    return %c0_i32, %c0_i32_0 : i32, i32
  }
  func.func @transform_11(%arg0: i32) -> (i32, i32) {
    %c0_i32 = arith.constant 0 : i32
    %c0_i32_0 = arith.constant 0 : i32
    %c0_i32_1 = arith.constant 0 : i32
    return %c0_i32, %c0_i32_0 : i32, i32
  }
  func.func @transform_12(%arg0: i32) -> (i32, i32) {
    %c0_i32 = arith.constant 0 : i32
    %c0_i32_0 = arith.constant 0 : i32
    %c0_i32_1 = arith.constant 0 : i32
    return %c0_i32, %c0_i32_0 : i32, i32
  }
  func.func @transform_13(%arg0: i32) -> (i32, i32) {
    %c0_i32 = arith.constant 0 : i32
    %c0_i32_0 = arith.constant 0 : i32
    %c0_i32_1 = arith.constant 0 : i32
    return %c0_i32, %c0_i32_0 : i32, i32
  }
  func.func @transform_14(%arg0: i32) -> (i32, i32) {
    %c0_i32 = arith.constant 0 : i32
    %c0_i32_0 = arith.constant 0 : i32
    %c0_i32_1 = arith.constant 0 : i32
    return %c0_i32, %c0_i32_0 : i32, i32
  }
  func.func @transform_15(%arg0: i32) -> (i32, i32) {
    %c0_i32 = arith.constant 0 : i32
    %c0_i32_0 = arith.constant 0 : i32
    %c0_i32_1 = arith.constant 0 : i32
    return %c0_i32, %c0_i32_0 : i32, i32
  }
  func.func @transform_16(%arg0: i32) -> (i32, i32) {
    %c0_i32 = arith.constant 0 : i32
    %c0_i32_0 = arith.constant 0 : i32
    %c0_i32_1 = arith.constant 0 : i32
    return %c0_i32, %c0_i32_0 : i32, i32
  }
  func.func @transform_17(%arg0: i32) -> (i32, i32) {
    %c0_i32 = arith.constant 0 : i32
    %c0_i32_0 = arith.constant 0 : i32
    %c0_i32_1 = arith.constant 0 : i32
    return %c0_i32, %c0_i32_0 : i32, i32
  }
  func.func @transform_18(%arg0: i32) -> (i32, i32, i32) {
    %c0_i32 = arith.constant 0 : i32
    %c0_i32_0 = arith.constant 0 : i32
    %c0_i32_1 = arith.constant 0 : i32
    return %arg0, %c0_i32, %c0_i32_0 : i32, i32, i32
  }
}

</mosaic_0001>

<bundles_post_ra>
// kernel: tpu_custom_call.1
= control target key start
LH: loop header
LB: loop body
LE: loop exit
PB: predicated region body
PF: predicated region fallthrough
CT: control target
= control target key end

     0   :  { %s3345_s0 = inlined_call_operand.hbm [shape: f32[2,8,32], index: 0, kind: input, shape index: {}]   ;;  %s3346_s1 = inlined_call_operand.hbm [shape: f32[2,8,8], index: 1, kind: input, shape index: {}]   ;;  %s3347_s2 = inlined_call_operand.vmem [shape: f32[32,32], index: 2, kind: input, shape index: {}]   ;;  %s3348_s3 = inlined_call_operand.vmem [shape: f32[1,32], index: 3, kind: input, shape index: {}]   ;;  %s3349_s4 = inlined_call_operand.vmem [shape: f32[32,32], index: 4, kind: input, shape index: {}]   ;;  %s3350_s5 = inlined_call_operand.vmem [shape: f32[1,32], index: 5, kind: input, shape index: {}]   ;;  %s3351_s6 = inlined_call_operand.vmem [shape: f32[32,32], index: 6, kind: input, shape index: {}]   ;;  %s3352_s7 = inlined_call_operand.vmem [shape: f32[1,32], index: 7, kind: input, shape index: {}]   ;;  %s3353_s8 = inlined_call_operand.vmem [shape: f32[32,32], index: 8, kind: input, shape index: {}]   ;;  %s3354_s9 = inlined_call_operand.vmem [shape: f32[1,32], index: 9, kind: input, shape index: {}]   ;;  %s3355_s10 = inlined_call_operand.vmem [shape: f32[1,32], index: 10, kind: input, shape index: {}]   ;;  %s3356_s11 = inlined_call_operand.vmem [shape: f32[1,32], index: 11, kind: input, shape index: {}]   ;;  %s3357_s12 = inlined_call_operand.vmem [shape: f32[1,32], index: 12, kind: input, shape index: {}]   ;;  %s3358_s13 = inlined_call_operand.vmem [shape: f32[1,32], index: 13, kind: input, shape index: {}]   ;;  %s3359_s14 = inlined_call_operand.vmem [shape: f32[32,128], index: 14, kind: input, shape index: {}]   ;;  %s3360_s15 = inlined_call_operand.vmem [shape: f32[1,128], index: 15, kind: input, shape index: {}]   ;;  %s3361_s16 = inlined_call_operand.vmem [shape: f32[128,32], index: 16, kind: input, shape index: {}]   ;;  %s3362_s17 = inlined_call_operand.vmem [shape: f32[1,32], index: 17, kind: input, shape index: {}]   ;;  %s3363_s18 = inlined_call_operand.hbm [shape: f32[2,8,32], index: 18, kind: output, shape index: {}]  }
   0x1   :  { %3368 = sst [smem:[#allocation11_spill]] %s3345_s0 }
   0x2   :  { %3369 = sst [smem:[#allocation12_spill]] %s3346_s1 }
   0x3   :  { %3370 = sst [smem:[#allocation13_spill]] %s3347_s2 }
   0x4   :  { %3371 = sst [smem:[#allocation14_spill]] %s3362_s17 }
   0x5   :  { %3372 = sst [smem:[#allocation15_spill]] %s3363_s18 }
   0x6   :  { %23 = vsyncpa [#allocation3], 0 }
   0x7   :  { %24 = vsyncpa [#allocation6], 0 }
   0x8   :  { %25 = vsyncpa [#allocation4], 0  ;;  %s2849_s27 = smov [#allocation2]   ;;  %s3373_s0 = sld [smem:[#allocation11_spill]] }
   0x9   :  { %s31_s28 = sshll.u32 %s2849_s27, 4  ;;  %s32_s28 = int_to_ptr.vmem [resolvable:$true] %s31_s28 }
   0xe   :  { %s2777_s19 = scalar_lea.hbm %s3373_s0, 256 }
   0xf   :  { %p2778_p0 = scmp.ne.s32.totalorder %s3373_s0, %s2777_s19  ;;  %p2781_p1 = scmp.lt.u32.totalorder %s2777_s19, %s3373_s0 }
  0x11   :  { %p2783_p2 = pnand %p2781_p1, %p2778_p0 }
  0x13   :  { %2786 = shalt.err (!%p2783_p2)
}
  0x14   :  { %s2787_s2 = scalar_lea.vmem %s32_s28, 256  ;;  %p2792_p4 = scmp.lt.s32.totalorder %s32_s28, %s32_s28 }
  0x15   :  { %p2788_p3 = scmp.ne.s32.totalorder %s32_s28, %s2787_s2  ;;  %p2793_p5 = scmp.lt.s32.totalorder %s2787_s2, %s2787_s2 }
  0x17   :  { %p2794_p6 = por %p2793_p5, %p2792_p4 }
  0x19   :  { %p2795_p7 = pnand %p2794_p6, %p2788_p3 }
  0x1b   :  { %2798 = shalt.err (!%p2795_p7)
}
  0x1c   :  { %s2850_s23 = smov 128   ;;  %s2851_s24 = smov 8  }
  0x1d   :  { %37 = dma.hbm_to_vmem [thread:$0]  %s3373_s0, 256, %s32_s28, [#allocation3], %s2850_s23, %s2850_s23, %s2851_s24  }
  0x1e   :  { %s2852_s27 = smov [#allocation5]   ;;  %s3374_s1 = sld [smem:[#allocation12_spill]] }
  0x1f   :  { %s43_s29 = sshll.u32 %s2852_s27, 4  ;;  %s44_s29 = int_to_ptr.vmem [resolvable:$true] %s43_s29 }
  0x24   :  { %s2799_s20 = scalar_lea.hbm %s3374_s1, 256 }
  0x25   :  { %p2800_p8 = scmp.ne.s32.totalorder %s3374_s1, %s2799_s20  ;;  %p2803_p9 = scmp.lt.u32.totalorder %s2799_s20, %s3374_s1 }
  0x27   :  { %p2805_p10 = pnand %p2803_p9, %p2800_p8 }
  0x29   :  { %2808 = shalt.err (!%p2805_p10)
}
  0x2a   :  { %s2809_s17 = scalar_lea.vmem %s44_s29, 256  ;;  %p2814_p12 = scmp.lt.s32.totalorder %s44_s29, %s44_s29 }
  0x2b   :  { %p2810_p11 = scmp.ne.s32.totalorder %s44_s29, %s2809_s17  ;;  %p2815_p13 = scmp.lt.s32.totalorder %s2809_s17, %s2809_s17 }
  0x2d   :  { %p2816_p0 = por %p2815_p13, %p2814_p12 }
  0x2f   :  { %p2817_p1 = pnand %p2816_p0, %p2810_p11 }
  0x31   :  { %2820 = shalt.err (!%p2817_p1)
}
  0x32   :  { %49 = dma.hbm_to_vmem [thread:$0]  %s3374_s1, 256, %s44_s29, [#allocation6], %s2850_s23, %s2850_s23, %s2851_s24  }
  0x33   :  { %2843 = dma.done.wait [#allocation3], 256  }
  0x34   :  { %2844 = vsyncadd [#allocation3], 4294967040 }
  0x35   :  { %2845 = dma.done.wait [#allocation6], 256  }
  0x36   :  { %2846 = vsyncadd [#allocation6], 4294967040  ;;  %vm90_vm0 = vcmask 261120   ;;  %v2984_v0 = vld [vmem:[#allocation2] sm:$0xff]  ;;  %v2986_v1 = vld [vmem:[#allocation2 + $0x8] sm:$0xff]  ;;  %s3375_s25 = sld [smem:[#allocation13_spill]] }
  0x37   :  { %v91_v2 = vsel %vm90_vm0, %v2984_v0, 0.0  ;;  %v94_v3 = vsel %vm90_vm0, %v2986_v1, 0.0  ;;  %v228_v20 = vld [vmem:[%s3349_s4] sm:$0xff]  ;;  %v229_v21 = vld [vmem:[%s3349_s4 + $0x8] sm:$0xff]  ;;  %v230_v37 = vld [vmem:[%s3349_s4 + $0x10] sm:$0xff]  ;;  %v2853_v48 = vmov 0.0  }
  0x38   :  { %92 = vadd.xlane.f32.xlu0 %v91_v2  ;;  %v2661_v22 = vpack.c.bf16 %v229_v21, %v228_v20  ;;  %v2338_v30 = vld [vmem:[%s3355_s10] ss:$0 sm:$0xff]  ;;  %v231_v38 = vld [vmem:[%s3349_s4 + $0x18] sm:$0xff]  ;;  %v315_v43 = vld [vmem:[%s3351_s6 + $0x8] sm:$0xff]  ;;  %2517 = vmatprep.subr.mxu0 %v2853_v48  ;;  %vm2854_vm1 = vmmov 0   ;;  %vm408_vm2 = vcmask 64512  }
  0x39   :  { %v2339_v32 = vld [vmem:[%s3356_s11] ss:$0 sm:$0xff]  ;;  %v2665_v41 = vpack.c.bf16 %v231_v38, %v230_v37  ;;  %v316_v45 = vld [vmem:[%s3351_s6 + $0x10] sm:$0xff]  ;;  %v317_v46 = vld [vmem:[%s3351_s6 + $0x18] sm:$0xff]  ;;  %2519 = vmatprep.mubr.msk.f32.mxu0 %vm2854_vm1, %v2853_v48  ;;  %s2857_s17 = smov 104   ;;  %s3376_s27 = sld [smem:[#allocation14_spill]] }
  0x3a   :  { %v314_v42 = vld [vmem:[%s3351_s6] sm:$0xff]  ;;  %v2673_v47 = vpack.c.bf16 %v317_v46, %v316_v45  ;;  %s2858_s29 = smov [#allocation7]  }
  0x3b   :  { %v2669_v44 = vpack.c.bf16 %v315_v43, %v314_v42  ;;  %v2340_v51 = vld [vmem:[%s3348_s3] ss:$0 sm:$0xff] }
  0x3c   :  { %95 = vadd.xlane.f32.xlu0 %v94_v3  ;;  %v136_v14 = vld [vmem:[%s3375_s25] sm:$0xff]  ;;  %v137_v15 = vld [vmem:[%s3375_s25 + $0x8] sm:$0xff]  ;;  %v138_v16 = vld [vmem:[%s3375_s25 + $0x10] sm:$0xff] }
  0x3d   :  { %v2653_v17 = vpack.c.bf16 %v137_v15, %v136_v14  ;;  %v139_v18 = vld [vmem:[%s3375_s25 + $0x18] sm:$0xff]  ;;  %v2343_v52 = vld [vmem:[%s3350_s5] ss:$0 sm:$0xff]  ;;  %s2855_s5 = smov 120  }
  0x3e   :  { %v2657_v19 = vpack.c.bf16 %v139_v18, %v138_v16  ;;  %v2346_v60 = vld [vmem:[%s3352_s7] ss:$0 sm:$0xff]  ;;  %s2856_s7 = smov 112  }
  0x3f   :  { %2654 = vmatprep.subr.bf16.mxu1 %v2653_v17 }
  0x40   :  { %2656 = vmatpush3.bf16.msra.mxu1 %v2653_v17  ;;  %v402_v17 = vld [vmem:[#allocation5] sm:$0xff] }
  0x41   :  { %2658 = vmatprep.subr.bf16.mxu1 %v2657_v19  ;;  %vm404_vm4 = vcmp.eq.f32.partialorder %v402_v17, 0.0 }
  0x42   :  { %v3100_v18 = vsel %vm404_vm4, -1e+09, %v2853_v48 }
  0x44   :  { %2660 = vmatpush3.bf16.msra.mxu1 %v2657_v19 }
  0x45   :  { %2662 = vmatprep.subr.bf16.mxu1 %v2661_v22 }
  0xc5   :  { %v93_v4 = vpop.xlane.xlu0 %92 }
  0xc6   :  { %v98_v5 = vmul.f32 0.03125, %v93_v4  ;;  %v403_v4 = vld [vmem:[#allocation5 + $0x8] sm:$0xff] }
  0xc7   :  { %vm405_vm3 = vcmp.eq.f32.partialorder %v403_v4, 0.0 }
  0xc8   :  { %v100_v6 = vsub.f32 %v2984_v0, %v98_v5 }
  0xc9   :  { %v96_v7 = vpop.xlane.xlu0 %95 }
  0xca   :  { %v99_v8 = vmul.f32 0.03125, %v96_v7  ;;  %v102_v9 = vmul.f32 %v100_v6, %v100_v6  ;;  %v3090_v7 = vsel %vm405_vm3, -1e+09, %v2853_v48 }
  0xcc   :  { %v101_v10 = vsub.f32 %v2986_v1, %v99_v8  ;;  %v104_v11 = vsel %vm90_vm0, %v102_v9, 0.0 }
  0xcd   :  { %105 = vadd.xlane.f32.xlu1 %v104_v11 }
  0xce   :  { %v103_v12 = vmul.f32 %v101_v10, %v101_v10 }
  0xd0   :  { %v107_v13 = vsel %vm90_vm0, %v103_v12, 0.0 }
  0xd1   :  { %108 = vadd.xlane.f32.xlu1 %v107_v13 }
 0x15a   :  { %v106_v23 = vpop.xlane.xlu1 %105 }
 0x15b   :  { %v110_v24 = vmul.f32 0.03125, %v106_v23 }
 0x15d   :  { %v112_v25 = vadd.f32 1e-05, %v110_v24 }
 0x15e   :  { %v109_v26 = vpop.xlane.xlu1 %108 }
 0x15f   :  { %2733 = vrsqrt.f32 %v112_v25  ;;  %v111_v27 = vmul.f32 0.03125, %v109_v26 }
 0x161   :  { %v113_v28 = vadd.f32 1e-05, %v111_v27 }
 0x163   :  { %2735 = vrsqrt.f32 %v113_v28 }
 0x169   :  { %v2734_v29 = vpop.eup %2733 }
 0x16a   :  { %v116_v31 = vmul.f32 %v2734_v29, %v100_v6 }
 0x16c   :  { %v125_v33 = vmul.f32 %v2338_v30, %v116_v31 }
 0x16d   :  { %v2736_v34 = vpop.eup %2735 }
 0x16e   :  { %v117_v35 = vmul.f32 %v2736_v34, %v101_v10  ;;  %v134_v36 = vadd.f32 %v2339_v32, %v125_v33 }
 0x170   :  { %v126_v39 = vmul.f32 %v2338_v30, %v117_v35  ;;  %2482 = vmatprep.mubr.msk.f32.mxu1 %vm90_vm0, %v134_v36 }
 0x172   :  { %v135_v40 = vadd.f32 %v2339_v32, %v126_v39 }
 0x174   :  { %2483 = vmatmul.mubr.msk.f32.vlgmr.msra.gmra.mrb[0].mxu1 %vm90_vm0, %v135_v40 }
 0x175   :  { %2664 = vmatpush3.bf16.msra.mxu1 %v2661_v22  ;;  %2493 = vmatprep.mubr.msk.f32.mxu1 %vm90_vm0, %v134_v36 }
 0x176   :  { %2666 = vmatprep.subr.bf16.mxu1 %v2665_v41 }
 0x179   :  { %2668 = vmatpush3.bf16.msra.mxu1 %v2665_v41 }
 0x17a   :  { %2670 = vmatprep.subr.bf16.mxu1 %v2669_v44 }
 0x17c   :  { %2494 = vmatmul.mubr.msk.f32.vlgmr.msra.gmra.mrb[2].mxu1 %vm90_vm0, %v135_v40 }
 0x17d   :  { %2672 = vmatpush3.bf16.msra.mxu1 %v2669_v44  ;;  %2504 = vmatprep.mubr.msk.f32.mxu1 %vm90_vm0, %v134_v36 }
 0x17e   :  { %2674 = vmatprep.subr.bf16.mxu1 %v2673_v47 }
 0x181   :  { %2676 = vmatpush3.bf16.msra.mxu1 %v2673_v47 }
 0x182   :  { %2507 = vmatprep.subr.mxu1 %v2853_v48 }
 0x184   :  { %2505 = vmatmul.mubr.msk.f32.vlgmr.msra.gmra.mrb[4].mxu1 %vm90_vm0, %v135_v40 }
 0x185   :  { %2509 = vmatprep.mubr.msk.f32.mxu1 %vm2854_vm1, %v2853_v48 }
 0x247   :  { %v2484_v49 = vpop.f32.mrb[0].mxu1 }
 0x248   :  { %v219_v50 = vpop.f32.mrb[1].mxu1  ;;  %v225_v57 = vadd.f32 %v2484_v49, %v2340_v51 }
 0x249   :  { %v220_v54 = vadd.f32 %v2340_v51, %v219_v50 }
 0x24a   :  { %v3074_v62 = vmul.f32 0.35355338, %v225_v57 }
 0x24b   :  { %v3060_v58 = vmul.f32 0.35355338, %v220_v54 }
 0x24f   :  { %v2495_v53 = vpop.f32.mrb[2].mxu1 }
 0x250   :  { %v305_v55 = vpop.f32.mrb[3].mxu1  ;;  %v3063_v59 = vadd.f32 %v2495_v53, %v2343_v52 }
 0x251   :  { %v3056_v56 = vadd.f32 %v2343_v52, %v305_v55 }
 0x253   :  { %2508 = vmatpush3.xpose.msk.msra.mxu1 %vm408_vm2, %v3056_v56 }
 0x254   :  { %2512 = vmatprep.subr.mxu1 %v2853_v48 }
 0x256   :  { %2510 = vmatmul.mubr.msk.f32.vlgmr.msra.gmra.mrb[6].mxu1 %vm408_vm2, %v3060_v58 }
 0x257   :  { %v2506_v61 = vpop.f32.mrb[4].mxu1  ;;  %2513 = vmatpush3.xpose.msk.msra.mxu1 %vm408_vm2, %v3063_v59  ;;  %2514 = vmatprep.mubr.msk.f32.mxu1 %vm2854_vm1, %v2853_v48 }
 0x258   :  { %v3076_v63 = vadd.f32 %v2506_v61, %v2346_v60  ;;  %v391_v2 = vpop.f32.mrb[5].mxu1  ;;  %2522 = vmatprep.subr.mxu1 %v2853_v48 }
 0x259   :  { %v3079_v3 = vadd.f32 %v2346_v60, %v391_v2 }
 0x25a   :  { %2515 = vmatmul.mubr.msk.f32.vlgmr.msra.gmra.mrb[8].mxu1 %vm408_vm2, %v3074_v62 }
 0x25b   :  { %2518 = vmatpush3.msra.mxu0 %v3079_v3  ;;  %2523 = vmatpush3.msra.mxu1 %v3076_v63 }
 0x25c   :  { %2524 = vmatprep.mubr.msk.f32.mxu1 %vm2854_vm1, %v2853_v48  ;;  %2532 = vmatprep.subr.mxu1 %v2853_v48 }
 0x25d   :  { %2527 = vmatprep.subr.mxu0 %v2853_v48 }
 0x329   :  { %v481_v5 = vpop.f32.mrb[6].mxu1 }
 0x32a   :  { %v2511_v6 = vpop.f32.mrb[7].mxu1  ;;  %v482_v19 = vadd.f32 %v481_v5, %v3100_v18 }
 0x32c   :  { %v561_v20 = vsel %vm408_vm2, %v482_v19, -inf }
 0x32d   :  { %v557_v8 = vpop.f32.mrb[8].mxu1 }
 0x32e   :  { %v558_v9 = vadd.f32 %v557_v8, %v3090_v7  ;;  %v2516_v10 = vpop.f32.mrb[9].mxu1 }
 0x330   :  { %v564_v11 = vsel %vm408_vm2, %v558_v9, -inf }
 0x331   :  { %565 = vmax.xlane.f32.xlu0 %v564_v11 }
 0x347   :  { %810 = vrot.lane.b32.xlu0 %v3063_v59, %s2855_s5 }
 0x3be   :  { %v566_v12 = vpop.xlane.xlu0 %565 }
 0x3bf   :  { %v568_v13 = vsub.f32 %v558_v9, %v566_v12 }
 0x3c1   :  { %v571_v14 = vmul.f32 1.442695, %v568_v13 }
 0x3c2   :  { %v811_v24 = vpop.permute.xlu0 %810 }
 0x3c3   :  { %2737 = vpow2.f32 %v571_v14 }
 0x3cd   :  { %v2738_v15 = vpop.eup %2737 }
 0x3ce   :  { %v576_v16 = vsel %vm408_vm2, %v2738_v15, 0.0 }
 0x3cf   :  { %577 = vadd.xlane.f32.xlu1 %v576_v16 }
 0x3e0   :  { %808 = vrot.lane.b32.xlu1 %v3074_v62, %s2855_s5 }
 0x404   :  { %562 = vmax.xlane.f32.xlu1 %v561_v20 }
 0x415   :  { %730 = vrot.lane.b32.xlu1 %v3060_v58, %s2855_s5 }
 0x45c   :  { %v578_v21 = vpop.xlane.xlu1 %577 }
 0x45d   :  { %2739 = vrcp.f32 %v578_v21 }
 0x460   :  { %v809_v25 = vpop.permute.xlu1 %808 }
 0x467   :  { %v2740_v22 = vpop.eup %2739 }
 0x468   :  { %v582_v23 = vmul.f32 %v2740_v22, %v2738_v15 }
 0x46a   :  { %2525 = vmatmul.mubr.msk.f32.vlgmr.msra.gmra.mrb[10].mxu1 %vm408_vm2, %v582_v23 }
 0x46b   :  { %2533 = vmatpush3.xpose.msk.msra.mxu1 %vm408_vm2, %v811_v24  ;;  %2534 = vmatprep.mubr.msk.f32.mxu1 %vm2854_vm1, %v2853_v48 }
 0x46c   :  { %2542 = vmatprep.subr.mxu1 %v2853_v48 }
 0x46e   :  { %2535 = vmatmul.mubr.msk.f32.vlgmr.msra.gmra.mrb[12].mxu1 %vm408_vm2, %v809_v25  ;;  %v1062_v25 = vld [vmem:[%s3353_s8 + $0x8] sm:$0xff] }
 0x46f   :  { %2544 = vmatprep.mubr.msk.f32.mxu1 %vm2854_vm1, %v2853_v48 }
 0x491   :  { %v563_v26 = vpop.xlane.xlu1 %562 }
 0x492   :  { %v567_v27 = vsub.f32 %v482_v19, %v563_v26  ;;  %v729_v26 = vld [vmem:[%s3353_s8] sm:$0xff] }
 0x494   :  { %v569_v28 = vmul.f32 1.442695, %v567_v27 }
 0x495   :  { %v731_v37 = vpop.permute.xlu1 %730 }
 0x496   :  { %2741 = vpow2.f32 %v569_v28 }
 0x4a0   :  { %v2742_v29 = vpop.eup %2741 }
 0x4a1   :  { %v573_v30 = vsel %vm408_vm2, %v2742_v29, 0.0 }
 0x4a2   :  { %574 = vadd.xlane.f32.xlu0 %v573_v30 }
 0x4b8   :  { %732 = vrot.lane.b32.xlu0 %v3056_v56, %s2855_s5 }
 0x52f   :  { %v575_v31 = vpop.xlane.xlu0 %574 }
 0x530   :  { %2743 = vrcp.f32 %v575_v31 }
 0x533   :  { %v733_v34 = vpop.permute.xlu0 %732 }
 0x53a   :  { %v2744_v32 = vpop.eup %2743 }
 0x53b   :  { %v581_v33 = vmul.f32 %v2744_v32, %v2742_v29 }
 0x53d   :  { %2520 = vmatmul.mubr.msk.f32.vlgmr.msra.gmra.mrb[0].mxu0 %vm408_vm2, %v581_v33  ;;  %v3118_v35 = vpop.f32.mrb[10].mxu1 }
 0x53e   :  { %2528 = vmatpush3.xpose.msk.msra.mxu0 %vm408_vm2, %v733_v34  ;;  %v2526_v36 = vpop.f32.mrb[11].mxu1  ;;  %2529 = vmatprep.mubr.msk.f32.mxu0 %vm2854_vm1, %v2853_v48 }
 0x53f   :  { %2537 = vmatprep.subr.mxu0 %v2853_v48 }
 0x541   :  { %2530 = vmatmul.mubr.msk.f32.vlgmr.msra.gmra.mrb[2].mxu0 %vm408_vm2, %v731_v37  ;;  %v882_v38 = vpop.f32.mrb[12].mxu1 }
 0x542   :  { %v883_v39 = vadd.f32 %v882_v38, %v3090_v7  ;;  %v2536_v40 = vpop.f32.mrb[13].mxu1  ;;  %2539 = vmatprep.mubr.msk.f32.mxu0 %vm2854_vm1, %v2853_v48 }
 0x544   :  { %v889_v41 = vsel %vm408_vm2, %v883_v39, -inf }
 0x545   :  { %890 = vmax.xlane.f32.xlu1 %v889_v41  ;;  %v1555_v41 = vld [vmem:[%s3353_s8 + $0x10] sm:$0xff] }
 0x556   :  { %1227 = vrot.lane.b32.xlu1 %v3056_v56, %s2856_s7 }
 0x55a   :  { %1225 = vrot.lane.b32.xlu1 %v3060_v58, %s2856_s7 }
 0x55e   :  { %1305 = vrot.lane.b32.xlu1 %v3063_v59, %s2856_s7 }
 0x5d2   :  { %v891_v42 = vpop.xlane.xlu1 %890 }
 0x5d3   :  { %v893_v43 = vsub.f32 %v883_v39, %v891_v42 }
 0x5d5   :  { %v896_v44 = vmul.f32 1.442695, %v893_v43 }
 0x5d6   :  { %v1228_v57 = vpop.permute.xlu1 %1227 }
 0x5d7   :  { %2745 = vpow2.f32 %v896_v44 }
 0x5da   :  { %v1226_v61 = vpop.permute.xlu1 %1225 }
 0x5de   :  { %v1306_v4 = vpop.permute.xlu1 %1305 }
 0x5e1   :  { %v2746_v45 = vpop.eup %2745 }
 0x5e2   :  { %v901_v46 = vsel %vm408_vm2, %v2746_v45, 0.0 }
 0x5e3   :  { %902 = vadd.xlane.f32.xlu0 %v901_v46 }
 0x5f9   :  { %986 = vrot.lane.b32.xlu0 %v3076_v63, %s2855_s5 }
 0x5fd   :  { %1303 = vrot.lane.b32.xlu0 %v3074_v62, %s2856_s7 }
 0x610   :  { %v3140_v47 = vpop.f32.mrb[0].mxu0 }
 0x611   :  { %v2521_v49 = vpop.f32.mrb[1].mxu0 }
 0x614   :  { %v804_v50 = vpop.f32.mrb[2].mxu0 }
 0x615   :  { %v805_v51 = vadd.f32 %v804_v50, %v3100_v18  ;;  %v2531_v52 = vpop.f32.mrb[3].mxu0 }
 0x617   :  { %v886_v53 = vsel %vm408_vm2, %v805_v51, -inf }
 0x618   :  { %887 = vmax.xlane.f32.xlu1 %v886_v53 }
 0x670   :  { %v903_v54 = vpop.xlane.xlu0 %902 }
 0x671   :  { %2747 = vrcp.f32 %v903_v54 }
 0x674   :  { %v987_v55 = vpop.permute.xlu0 %986 }
 0x675   :  { %2543 = vmatpush3.msra.mxu1 %v987_v55 }
 0x676   :  { %2557 = vmatprep.subr.mxu1 %v2853_v48 }
 0x678   :  { %v1304_v5 = vpop.permute.xlu0 %1303 }
 0x67b   :  { %v2748_v60 = vpop.eup %2747 }
 0x67c   :  { %v907_v2 = vmul.f32 %v2748_v60, %v2746_v45 }
 0x67e   :  { %2545 = vmatmul.mubr.msk.f32.vlgmr.msra.gmra.mrb[14].mxu1 %vm408_vm2, %v907_v2 }
 0x67f   :  { %2558 = vmatpush3.xpose.msk.msra.mxu1 %vm408_vm2, %v1228_v57  ;;  %2559 = vmatprep.mubr.msk.f32.mxu1 %vm2854_vm1, %v2853_v48 }
 0x680   :  { %2562 = vmatprep.subr.mxu1 %v2853_v48 }
 0x682   :  { %2560 = vmatmul.mubr.msk.f32.vlgmr.msra.gmra.mrb[16].mxu1 %vm408_vm2, %v1226_v61 }
 0x683   :  { %2563 = vmatpush3.xpose.msk.msra.mxu1 %vm408_vm2, %v1306_v4  ;;  %2564 = vmatprep.mubr.msk.f32.mxu1 %vm2854_vm1, %v2853_v48 }
 0x684   :  { %2572 = vmatprep.subr.mxu1 %v2853_v48 }
 0x686   :  { %2565 = vmatmul.mubr.msk.f32.vlgmr.msra.gmra.mrb[18].mxu1 %vm408_vm2, %v1304_v5 }
 0x687   :  { %2574 = vmatprep.mubr.msk.f32.mxu1 %vm2854_vm1, %v2853_v48 }
 0x6a5   :  { %v888_v6 = vpop.xlane.xlu1 %887 }
 0x6a6   :  { %v892_v8 = vsub.f32 %v805_v51, %v888_v6 }
 0x6a8   :  { %v894_v9 = vmul.f32 1.442695, %v892_v8 }
 0x6aa   :  { %2749 = vpow2.f32 %v894_v9 }
 0x6b4   :  { %v2750_v10 = vpop.eup %2749 }
 0x6b5   :  { %v898_v11 = vsel %vm408_vm2, %v2750_v10, 0.0 }
 0x6b6   :  { %899 = vadd.xlane.f32.xlu0 %v898_v11 }
 0x6cc   :  { %909 = vrot.lane.b32.xlu0 %v3079_v3, %s2855_s5 }
 0x6d0   :  { %1479 = vrot.lane.b32.xlu0 %v3076_v63, %s2856_s7 }
 0x6d4   :  { %1641 = vrot.lane.b32.xlu0 %v3056_v56, %s2857_s17 }
 0x6d8   :  { %1719 = vrot.lane.b32.xlu0 %v3063_v59, %s2857_s17 }
 0x6dc   :  { %1639 = vrot.lane.b32.xlu0 %v3060_v58, %s2857_s17 }
 0x743   :  { %v900_v12 = vpop.xlane.xlu0 %899 }
 0x744   :  { %2751 = vrcp.f32 %v900_v12 }
 0x747   :  { %v910_v13 = vpop.permute.xlu0 %909 }
 0x748   :  { %2538 = vmatpush3.msra.mxu0 %v910_v13 }
 0x749   :  { %2547 = vmatprep.subr.mxu0 %v1062_v25 }
 0x74b   :  { %v1480_v14 = vpop.permute.xlu0 %1479 }
 0x74c   :  { %2573 = vmatpush3.msra.mxu1 %v1480_v14 }
 0x74d   :  { %2582 = vmatprep.subr.mxu1 %v2853_v48 }
 0x74e   :  { %v2752_v15 = vpop.eup %2751 }
 0x74f   :  { %v906_v16 = vmul.f32 %v2752_v15, %v2750_v10  ;;  %v1642_v43 = vpop.permute.xlu0 %1641 }
 0x751   :  { %2540 = vmatmul.mubr.msk.f32.vlgmr.msra.gmra.mrb[4].mxu0 %vm408_vm2, %v906_v16  ;;  %v1058_v17 = vpop.f32.mrb[14].mxu1 }
 0x752   :  { %v2546_v56 = vpop.f32.mrb[15].mxu1  ;;  %2548 = vmatpush3.msra.mxu0 %v1062_v25  ;;  %v2381_v25 = vld [vmem:[%s3354_s9] ss:$0 sm:$0xff] }
 0x753   :  { %2552 = vmatprep.subr.mxu0 %v729_v26  ;;  %v1720_v46 = vpop.permute.xlu0 %1719 }
 0x755   :  { %v1299_v19 = vpop.f32.mrb[16].mxu1 }
 0x756   :  { %v1300_v59 = vadd.f32 %v1299_v19, %v3100_v18  ;;  %v2561_v20 = vpop.f32.mrb[17].mxu1 }
 0x757   :  { %v1640_v49 = vpop.permute.xlu0 %1639 }
 0x758   :  { %v1381_v58 = vsel %vm408_vm2, %v1300_v59, -inf }
 0x759   :  { %1382 = vmax.xlane.f32.xlu1 %v1381_v58  ;;  %v1377_v21 = vpop.f32.mrb[18].mxu1  ;;  %v1969_v58 = vld [vmem:[%s3353_s8 + $0x18] sm:$0xff] }
 0x75a   :  { %v1378_v22 = vadd.f32 %v1377_v21, %v3090_v7  ;;  %v2566_v23 = vpop.f32.mrb[19].mxu1 }
 0x75c   :  { %v1384_v24 = vsel %vm408_vm2, %v1378_v22, -inf }
 0x75d   :  { %1385 = vmax.xlane.f32.xlu1 %v1384_v24 }
 0x7e6   :  { %v1383_v27 = vpop.xlane.xlu1 %1382 }
 0x7e7   :  { %v1387_v28 = vsub.f32 %v1300_v59, %v1383_v27 }
 0x7e9   :  { %v1389_v29 = vmul.f32 1.442695, %v1387_v28 }
 0x7ea   :  { %v1386_v30 = vpop.xlane.xlu1 %1385 }
 0x7eb   :  { %2753 = vpow2.f32 %v1389_v29  ;;  %v1388_v31 = vsub.f32 %v1378_v22, %v1386_v30 }
 0x7ed   :  { %v1391_v32 = vmul.f32 1.442695, %v1388_v31 }
 0x7ef   :  { %2755 = vpow2.f32 %v1391_v32 }
 0x7f5   :  { %v2754_v33 = vpop.eup %2753 }
 0x7f6   :  { %v1393_v34 = vsel %vm408_vm2, %v2754_v33, 0.0 }
 0x7f7   :  { %1394 = vadd.xlane.f32.xlu1 %v1393_v34 }
 0x7f9   :  { %v2756_v36 = vpop.eup %2755 }
 0x7fa   :  { %v1396_v37 = vsel %vm408_vm2, %v2756_v36, 0.0 }
 0x7fb   :  { %1397 = vadd.xlane.f32.xlu1 %v1396_v37 }
 0x80c   :  { %1403 = vrot.lane.b32.xlu1 %v3079_v3, %s2856_s7 }
 0x810   :  { %1717 = vrot.lane.b32.xlu1 %v3074_v62, %s2857_s17 }
 0x824   :  { %v981_v38 = vpop.f32.mrb[4].mxu0 }
 0x825   :  { %v2541_v39 = vpop.f32.mrb[5].mxu0  ;;  %2549 = vmatprep.mubr.msk.f32.mxu0 %vm408_vm2, %v981_v38 }
 0x826   :  { %2550 = vmatmul.mubr.msk.f32.vlgmr.msra.gmra.mrb[6].mxu0 %vm408_vm2, %v1058_v17 }
 0x827   :  { %2554 = vmatprep.mubr.msk.f32.mxu0 %vm408_vm2, %v3140_v47  ;;  %2553 = vmatpush3.msra.mxu0 %v729_v26 }
 0x828   :  { %2567 = vmatprep.subr.mxu0 %v2853_v48 }
 0x82e   :  { %2555 = vmatmul.mubr.msk.f32.vlgmr.msra.gmra.mrb[6].mxu0 %vm408_vm2, %v3118_v35 }
 0x82f   :  { %2569 = vmatprep.mubr.msk.f32.mxu0 %vm2854_vm1, %v2853_v48 }
 0x884   :  { %v1395_v40 = vpop.xlane.xlu1 %1394 }
 0x885   :  { %2757 = vrcp.f32 %v1395_v40 }
 0x888   :  { %v1398_v62 = vpop.xlane.xlu1 %1397 }
 0x889   :  { %2759 = vrcp.f32 %v1398_v62 }
 0x88c   :  { %v1404_v42 = vpop.permute.xlu1 %1403 }
 0x88d   :  { %2568 = vmatpush3.msra.mxu0 %v1404_v42  ;;  %v2109_v42 = vld [vmem:[%s3359_s14 + $0x8] sm:$0xff] }
 0x88e   :  { %2577 = vmatprep.subr.mxu0 %v1555_v41 }
 0x88f   :  { %v2758_v44 = vpop.eup %2757 }
 0x890   :  { %v1401_v45 = vmul.f32 %v2758_v44, %v2754_v33  ;;  %v1718_v54 = vpop.permute.xlu1 %1717  ;;  %v2110_v44 = vld [vmem:[%s3359_s14 + $0x10] sm:$0xff] }
 0x892   :  { %2570 = vmatmul.mubr.msk.f32.vlgmr.msra.gmra.mrb[8].mxu0 %vm408_vm2, %v1401_v45  ;;  %v2111_v45 = vld [vmem:[%s3359_s14 + $0x18] sm:$0xff] }
 0x893   :  { %v2760_v35 = vpop.eup %2759  ;;  %2578 = vmatpush3.msra.mxu0 %v1555_v41  ;;  %v2108_v41 = vld [vmem:[%s3359_s14] sm:$0xff] }
 0x894   :  { %v1402_v47 = vmul.f32 %v2760_v35, %v2756_v36  ;;  %2587 = vmatprep.subr.mxu0 %v2853_v48  ;;  %v2681_v35 = vpack.c.bf16 %v2111_v45, %v2110_v44 }
 0x896   :  { %2575 = vmatmul.mubr.msk.f32.vlgmr.msra.gmra.mrb[20].mxu1 %vm408_vm2, %v1402_v47  ;;  %v2219_v47 = vld [vmem:[%s3361_s16 + $0x8] sm:$0xff] }
 0x897   :  { %2583 = vmatpush3.xpose.msk.msra.mxu1 %vm408_vm2, %v1642_v43  ;;  %2584 = vmatprep.mubr.msk.f32.mxu1 %vm2854_vm1, %v2853_v48  ;;  %v2677_v43 = vpack.c.bf16 %v2109_v42, %v2108_v41 }
 0x898   :  { %2592 = vmatprep.subr.mxu1 %v2853_v48 }
 0x89a   :  { %2585 = vmatmul.mubr.msk.f32.vlgmr.msra.gmra.mrb[22].mxu1 %vm408_vm2, %v1640_v49 }
 0x89b   :  { %2594 = vmatprep.mubr.msk.f32.mxu1 %vm2854_vm1, %v2853_v48 }
 0x965   :  { %v1475_v50 = vpop.f32.mrb[8].mxu0 }
 0x966   :  { %v2571_v51 = vpop.f32.mrb[9].mxu0  ;;  %2579 = vmatprep.mubr.msk.f32.mxu0 %vm408_vm2, %v1475_v50 }
 0x969   :  { %v1551_v52 = vpop.f32.mrb[20].mxu1 }
 0x96a   :  { %v2576_v53 = vpop.f32.mrb[21].mxu1  ;;  %2580 = vmatmul.mubr.msk.f32.vlgmr.msra.gmra.mrb[6].mxu0 %vm408_vm2, %v1551_v52 }
 0x96b   :  { %2588 = vmatpush3.xpose.msk.msra.mxu0 %vm408_vm2, %v1720_v46  ;;  %2589 = vmatprep.mubr.msk.f32.mxu0 %vm2854_vm1, %v2853_v48  ;;  %v2218_v46 = vld [vmem:[%s3361_s16] sm:$0xff] }
 0x96c   :  { %2597 = vmatprep.subr.mxu0 %v2853_v48  ;;  %v2685_v49 = vpack.c.bf16 %v2219_v47, %v2218_v46  ;;  %v2387_v47 = vld [vmem:[%s3376_s27] ss:$0 sm:$0xff] }
 0x96d   :  { %v1713_v55 = vpop.f32.mrb[22].mxu1 }
 0x96e   :  { %v1714_v57 = vadd.f32 %v1713_v55, %v3100_v18  ;;  %v2586_v60 = vpop.f32.mrb[23].mxu1  ;;  %2590 = vmatmul.mubr.msk.f32.vlgmr.msra.gmra.mrb[10].mxu0 %vm408_vm2, %v1718_v54 }
 0x96f   :  { %2599 = vmatprep.mubr.msk.f32.mxu0 %vm2854_vm1, %v2853_v48  ;;  %v2382_v60 = vld [vmem:[%s3357_s12] ss:$0 sm:$0xff] }
 0x970   :  { %v1795_v61 = vsel %vm408_vm2, %v1714_v57, -inf }
 0x971   :  { %1796 = vmax.xlane.f32.xlu0 %v1795_v61 }
 0x9fe   :  { %v1797_v2 = vpop.xlane.xlu0 %1796 }
 0x9ff   :  { %v1801_v4 = vsub.f32 %v1714_v57, %v1797_v2 }
 0xa01   :  { %v1803_v5 = vmul.f32 1.442695, %v1801_v4 }
 0xa03   :  { %2761 = vpow2.f32 %v1803_v5 }
 0xa0d   :  { %v2762_v6 = vpop.eup %2761 }
 0xa0e   :  { %v1807_v8 = vsel %vm408_vm2, %v2762_v6, 0.0 }
 0xa0f   :  { %1808 = vadd.xlane.f32.xlu0 %v1807_v8 }
 0xa41   :  { %v1791_v9 = vpop.f32.mrb[10].mxu0 }
 0xa42   :  { %v1792_v18 = vadd.f32 %v1791_v9, %v3090_v7  ;;  %v2591_v10 = vpop.f32.mrb[11].mxu0 }
 0xa43   :  { %v2220_v10 = vld [vmem:[%s3361_s16 + $0x10] sm:$0xff] }
 0xa44   :  { %v1798_v11 = vsel %vm408_vm2, %v1792_v18, -inf }
 0xa45   :  { %1799 = vmax.xlane.f32.xlu1 %v1798_v11  ;;  %v2221_v11 = vld [vmem:[%s3361_s16 + $0x18] sm:$0xff] }
 0xa56   :  { %1893 = vrot.lane.b32.xlu1 %v3076_v63, %s2857_s17 }
 0xa9c   :  { %v1809_v7 = vpop.xlane.xlu0 %1808 }
 0xad2   :  { %v1800_v48 = vpop.xlane.xlu1 %1799 }
 0xad3   :  { %v1802_v12 = vsub.f32 %v1792_v18, %v1800_v48  ;;  %v2689_v48 = vpack.c.bf16 %v2221_v11, %v2220_v10 }
 0xad5   :  { %v1805_v13 = vmul.f32 1.442695, %v1802_v12  ;;  %v2222_v12 = vld [vmem:[%s3361_s16 + $0x20] sm:$0xff] }
 0xad6   :  { %v1894_v14 = vpop.permute.xlu1 %1893 }
 0xad7   :  { %2763 = vpow2.f32 %v1805_v13  ;;  %2598 = vmatpush3.msra.mxu0 %v1894_v14  ;;  %v2223_v13 = vld [vmem:[%s3361_s16 + $0x28] sm:$0xff] }
 0xad8   :  { %2765 = vrcp.f32 %v1809_v7  ;;  %2602 = vmatprep.subr.mxu0 %v1969_v58  ;;  %v2693_v14 = vpack.c.bf16 %v2223_v13, %v2222_v12 }
 0xae1   :  { %v2764_v15 = vpop.eup %2763 }
 0xae2   :  { %v1810_v16 = vsel %vm408_vm2, %v2764_v15, 0.0  ;;  %v2766_v56 = vpop.eup %2765 }
 0xae3   :  { %1811 = vadd.xlane.f32.xlu0 %v1810_v16  ;;  %v1815_v19 = vmul.f32 %v2766_v56, %v2762_v6  ;;  %v2383_v6 = vld [vmem:[%s3358_s13] ss:$0 sm:$0xff]  ;;  %v2225_v16 = vld [vmem:[%s3361_s16 + $0x38] sm:$0xff]  ;;  %v2227_v56 = vld [vmem:[%s3361_s16 + $0x48] sm:$0xff]  ;;  %s2325_s13 = sshll.u32 %s2858_s29, 4  ;;  %s2326_s13 = int_to_ptr.vmem [resolvable:$true] %s2325_s13 }
 0xae4   :  { %s2821_s10 = scalar_lea.vmem %s2326_s13, 256  ;;  %p2826_p3 = scmp.lt.s32.totalorder %s2326_s13, %s2326_s13 }
 0xae5   :  { %p2822_p2 = scmp.ne.s32.totalorder %s2326_s13, %s2821_s10  ;;  %p2827_p4 = scmp.lt.s32.totalorder %s2821_s10, %s2821_s10 }
 0xae7   :  { %p2828_p5 = por %p2827_p4, %p2826_p3 }
 0xae9   :  { %p2829_p6 = pnand %p2828_p5, %p2822_p2 }
 0xaf9   :  { %1817 = vrot.lane.b32.xlu0 %v3079_v3, %s2857_s17 }
 0xb70   :  { %v1812_v17 = vpop.xlane.xlu0 %1811 }
 0xb71   :  { %2767 = vrcp.f32 %v1812_v17  ;;  %v2226_v17 = vld [vmem:[%s3361_s16 + $0x40] sm:$0xff] }
 0xb74   :  { %v1818_v63 = vpop.permute.xlu0 %1817 }
 0xb75   :  { %2593 = vmatpush3.msra.mxu1 %v1818_v63  ;;  %v2228_v63 = vld [vmem:[%s3361_s16 + $0x50] sm:$0xff] }
 0xb76   :  { %2595 = vmatmul.mubr.msk.f32.vlgmr.msra.gmra.mrb[24].mxu1 %vm408_vm2, %v1815_v19  ;;  %2678 = vmatprep.subr.bf16.mxu1 %v2677_v43  ;;  %v2701_v19 = vpack.c.bf16 %v2227_v56, %v2226_v17 }
 0xb77   :  { %2680 = vmatpush3.bf16.msra.mxu1 %v2677_v43 }
 0xb78   :  { %2682 = vmatprep.subr.bf16.mxu1 %v2681_v35 }
 0xb7b   :  { %v2768_v59 = vpop.eup %2767  ;;  %2684 = vmatpush3.bf16.msra.mxu1 %v2681_v35 }
 0xb7c   :  { %v1816_v20 = vmul.f32 %v2768_v59, %v2764_v15  ;;  %v2224_v15 = vld [vmem:[%s3361_s16 + $0x30] sm:$0xff]  ;;  %v2229_v59 = vld [vmem:[%s3361_s16 + $0x58] sm:$0xff] }
 0xb7d   :  { %v2697_v7 = vpack.c.bf16 %v2225_v16, %v2224_v15 }
 0xb7e   :  { %2600 = vmatmul.mubr.msk.f32.vlgmr.msra.gmra.mrb[12].mxu0 %vm408_vm2, %v1816_v20  ;;  %v2705_v20 = vpack.c.bf16 %v2229_v59, %v2228_v63 }
 0xb7f   :  { %2603 = vmatpush3.msra.mxu0 %v1969_v58  ;;  %v2230_v58 = vld [vmem:[%s3361_s16 + $0x60] sm:$0xff] }
 0xb80   :  { %2686 = vmatprep.subr.bf16.mxu0 %v2685_v49 }
 0xc49   :  { %v1889_v3 = vpop.f32.mrb[24].mxu1 }
 0xc4a   :  { %v2596_v21 = vpop.f32.mrb[25].mxu1  ;;  %2604 = vmatprep.mubr.msk.f32.mxu0 %vm408_vm2, %v1889_v3  ;;  %v2231_v3 = vld [vmem:[%s3361_s16 + $0x68] sm:$0xff] }
 0xc4b   :  { %v2709_v21 = vpack.c.bf16 %v2231_v3, %v2230_v58 }
 0xc51   :  { %v1965_v22 = vpop.f32.mrb[12].mxu0 }
 0xc52   :  { %v2601_v23 = vpop.f32.mrb[13].mxu0  ;;  %2605 = vmatmul.mubr.msk.f32.vlgmr.msra.gmra.mrb[6].mxu0 %vm408_vm2, %v1965_v22  ;;  %v2232_v22 = vld [vmem:[%s3361_s16 + $0x70] sm:$0xff] }
 0xc53   :  { %2688 = vmatpush3.bf16.msra.mxu0 %v2685_v49  ;;  %v2233_v23 = vld [vmem:[%s3361_s16 + $0x78] sm:$0xff] }
 0xc54   :  { %2690 = vmatprep.subr.bf16.mxu0 %v2689_v48 }
 0xc57   :  { %2692 = vmatpush3.bf16.msra.mxu0 %v2689_v48 }
 0xc58   :  { %2694 = vmatprep.subr.bf16.mxu0 %v2693_v14 }
 0xc5b   :  { %2696 = vmatpush3.bf16.msra.mxu0 %v2693_v14 }
 0xc5c   :  { %2698 = vmatprep.subr.bf16.mxu0 %v2697_v7 }
 0xc5f   :  { %2700 = vmatpush3.bf16.msra.mxu0 %v2697_v7 }
 0xc60   :  { %2702 = vmatprep.subr.bf16.mxu0 %v2701_v19 }
 0xc63   :  { %2704 = vmatpush3.bf16.msra.mxu0 %v2701_v19 }
 0xc64   :  { %2706 = vmatprep.subr.bf16.mxu0 %v2705_v20 }
 0xc67   :  { %2708 = vmatpush3.bf16.msra.mxu0 %v2705_v20 }
 0xc68   :  { %2710 = vmatprep.subr.bf16.mxu0 %v2709_v21 }
 0xc6b   :  { %2712 = vmatpush3.bf16.msra.mxu0 %v2709_v21 }
 0xd25   :  { %v2606_v24 = vpop.f32.mrb[6].mxu0 }
 0xd26   :  { %v2054_v26 = vadd.f32 %v2606_v24, %v2986_v1  ;;  %v2042_v27 = vpop.f32.mrb[7].mxu0  ;;  %v2713_v24 = vpack.c.bf16 %v2233_v23, %v2232_v22 }
 0xd27   :  { %v2053_v28 = vadd.f32 %v2042_v27, %v2984_v0 }
 0xd28   :  { %v3240_v29 = vadd.f32 %v2381_v25, %v2054_v26  ;;  %2714 = vmatprep.subr.bf16.mxu0 %v2713_v24 }
 0xd29   :  { %v3242_v30 = vadd.f32 %v2381_v25, %v2053_v28  ;;  %2716 = vmatpush3.bf16.msra.mxu0 %v2713_v24  ;;  %v2384_v25 = vld [vmem:[%s3360_s15] ss:$0 sm:$0xff] }
 0xd2a   :  { %v2067_v31 = vsel %vm90_vm0, %v3240_v29, 0.0 }
 0xd2b   :  { %2068 = vadd.xlane.f32.xlu0 %v2067_v31  ;;  %v2064_v32 = vsel %vm90_vm0, %v3242_v30, 0.0 }
 0xd2c   :  { %2065 = vadd.xlane.f32.xlu1 %v2064_v32 }
 0xdb8   :  { %v2069_v33 = vpop.xlane.xlu0 %2068 }
 0xdb9   :  { %v2071_v34 = vmul.f32 0.03125, %v2069_v33  ;;  %v2066_v36 = vpop.xlane.xlu1 %2065 }
 0xdba   :  { %v2070_v37 = vmul.f32 0.03125, %v2066_v36 }
 0xdbb   :  { %v2073_v1 = vsub.f32 %v3240_v29, %v2071_v34 }
 0xdbc   :  { %v2072_v0 = vsub.f32 %v3242_v30, %v2070_v37 }
 0xdbd   :  { %v2075_v38 = vmul.f32 %v2073_v1, %v2073_v1 }
 0xdbe   :  { %v2074_v39 = vmul.f32 %v2072_v0, %v2072_v0 }
 0xdbf   :  { %v2079_v40 = vsel %vm90_vm0, %v2075_v38, 0.0 }
 0xdc0   :  { %2080 = vadd.xlane.f32.xlu1 %v2079_v40  ;;  %v2076_v62 = vsel %vm90_vm0, %v2074_v39, 0.0 }
 0xdc1   :  { %2077 = vadd.xlane.f32.xlu0 %v2076_v62 }
 0xe4d   :  { %v2081_v50 = vpop.xlane.xlu1 %2080 }
 0xe4e   :  { %v2083_v51 = vmul.f32 0.03125, %v2081_v50  ;;  %v2078_v52 = vpop.xlane.xlu0 %2077 }
 0xe4f   :  { %v2082_v53 = vmul.f32 0.03125, %v2078_v52 }
 0xe50   :  { %v2085_v54 = vadd.f32 1e-05, %v2083_v51 }
 0xe51   :  { %v2084_v55 = vadd.f32 1e-05, %v2082_v53 }
 0xe52   :  { %2769 = vrsqrt.f32 %v2085_v54 }
 0xe53   :  { %2771 = vrsqrt.f32 %v2084_v55 }
 0xe5c   :  { %v2770_v57 = vpop.eup %2769 }
 0xe5d   :  { %v2772_v61 = vpop.eup %2771  ;;  %v2089_v2 = vmul.f32 %v2770_v57, %v2073_v1 }
 0xe5e   :  { %v2088_v4 = vmul.f32 %v2772_v61, %v2072_v0 }
 0xe5f   :  { %v2098_v5 = vmul.f32 %v2382_v60, %v2089_v2 }
 0xe60   :  { %v2097_v8 = vmul.f32 %v2382_v60, %v2088_v4 }
 0xe61   :  { %v2107_v18 = vadd.f32 %v2383_v6, %v2098_v5 }
 0xe62   :  { %v2106_v9 = vadd.f32 %v2383_v6, %v2097_v8 }
 0xe64   :  { %2615 = vmatprep.mubr.msk.f32.mxu1 %vm90_vm0, %v2106_v9 }
 0xe65   :  { %2616 = vmatmul.mubr.msk.f32.vlgmr.msra.gmra.mrb[26].mxu1 %vm90_vm0, %v2107_v18 }
 0xf38   :  { %v2617_v26 = vpop.f32.mrb[26].mxu1 }
 0xf39   :  { %v2197_v27 = vadd.f32 %v2617_v26, %v2384_v25  ;;  %v2191_v28 = vpop.f32.mrb[27].mxu1 }
 0xf3a   :  { %v2192_v31 = vadd.f32 %v2384_v25, %v2191_v28 }
 0xf3b   :  { %v2201_v32 = vmul.f32 %v2197_v27, %v2197_v27  ;;  %v2205_v33 = vmul.f32 0.044715, %v2197_v27  ;;  %v2203_v45 = vmul.f32 0.5, %v2197_v27 }
 0xf3c   :  { %v2200_v34 = vmul.f32 %v2192_v31, %v2192_v31  ;;  %v2204_v36 = vmul.f32 0.044715, %v2192_v31  ;;  %v2202_v43 = vmul.f32 0.5, %v2192_v31 }
 0xf3d   :  { %v2207_v37 = vmul.f32 %v2205_v33, %v2201_v32 }
 0xf3e   :  { %v2206_v1 = vmul.f32 %v2204_v36, %v2200_v34 }
 0xf3f   :  { %v2209_v0 = vadd.f32 %v2207_v37, %v2197_v27 }
 0xf40   :  { %v2208_v38 = vadd.f32 %v2206_v1, %v2192_v31 }
 0xf41   :  { %v2211_v39 = vmul.f32 0.7978846, %v2209_v0 }
 0xf42   :  { %v2210_v40 = vmul.f32 0.7978846, %v2208_v38 }
 0xf43   :  { %2773 = vtanh.f32 %v2211_v39 }
 0xf44   :  { %2775 = vtanh.f32 %v2210_v40 }
 0xf4d   :  { %v2774_v62 = vpop.eup %2773 }
 0xf4e   :  { %v2776_v41 = vpop.eup %2775  ;;  %v2215_v42 = vadd.f32 1.0, %v2774_v62 }
 0xf4f   :  { %v2214_v44 = vadd.f32 1.0, %v2776_v41 }
 0xf50   :  { %v2217_v46 = vmul.f32 %v2215_v42, %v2203_v45 }
 0xf51   :  { %v2216_v35 = vmul.f32 %v2214_v44, %v2202_v43 }
 0xf53   :  { %2650 = vmatprep.mubr.f32.mxu0 %v2216_v35 }
 0xf54   :  { %2651 = vmatmul.mubr.f32.vlgmr.msra.gmra.mrb[14].mxu0 %v2217_v46 }
0x1027   :  { %v2652_v49 = vpop.f32.mrb[14].mxu0 }
0x1028   :  { %v2313_v50 = vadd.f32 %v2652_v49, %v2387_v47  ;;  %v2307_v51 = vpop.f32.mrb[15].mxu0 }
0x1029   :  { %v2308_v52 = vadd.f32 %v2387_v47, %v2307_v51 }
0x102a   :  { %v2317_v53 = vadd.f32 %v2313_v50, %v3240_v29 }
0x102b   :  { %v2316_v54 = vadd.f32 %v2308_v52, %v3242_v30 }
0x102c   :  { %2319 = vst.msk [vmem:[#allocation7 + $0x8] sm:$0xff] %vm90_vm0, %v2317_v53 }
0x102d   :  { %2318 = vst.msk [vmem:[#allocation7] sm:$0xff] %vm90_vm0, %v2316_v54 }
0x102e   :  { %2832 = shalt.err (!%p2829_p6)
}
0x102f   :  { %s3377_s19 = sld [smem:[#allocation15_spill]] }
0x1035   :  { %s2833_s4 = scalar_lea.hbm %s3377_s19, 256 }
0x1036   :  { %p2834_p7 = scmp.ne.s32.totalorder %s3377_s19, %s2833_s4  ;;  %p2837_p8 = scmp.lt.u32.totalorder %s2833_s4, %s3377_s19 }
0x1038   :  { %p2839_p9 = pnand %p2837_p8, %p2834_p7 }
0x103a   :  { %2842 = shalt.err (!%p2839_p9)
}
0x103b   :  { %2331 = dma.vmem_to_hbm [thread:$0]  %s2326_s13, 256, %s3377_s19, [#allocation4], %s2850_s23, %s2850_s23, %s2851_s24  }
0x103c   :  { %2847 = dma.done.wait [#allocation4], 256  }
0x103d   :  { %2848 = vsyncadd [#allocation4], 4294967040 }
0x103e   :  { %2335 = vsyncpa [#allocation3], 1 }
0x103f   :  { %2336 = vsyncpa [#allocation6], 1 }
0x1040   :  { %2337 = vsyncpa [#allocation4], 1 }

</bundles_post_ra>
